<compile_context>
chip_gen: v7x
topology: tpu7x:2x2x1
jax: 0.10.0
libtpu: 0.0.40
codegen_flags: <defaults>
</compile_context>

<pallas_src>
import math
import functools

import jax
import jax.numpy as jnp
from jax.experimental import pallas as pl
from jax.experimental.pallas import tpu as pltpu


def _mha_kernel(x_ref, mask_ref, perm_ref, wq_ref, bq_ref, wk_ref, bk_ref,
                wv_ref, bv_ref, wo_ref, bo_ref, out_ref, *, n_heads, seq_len):
    """Fused MHA forward for one block of batches.

    x_ref:    (BB*S, E)      activations (batch rows folded into M)
    mask_ref: (BB, 1, S, S)  float mask, 1.0 == masked (reused across heads)
    perm_ref: (hidden, hidden) 0/1 matrix encoding the literal torch head merge
    out_ref:  (BB*S, E)
    """
    S = seq_len
    H = n_heads
    hidden = wq_ref.shape[1]
    Dh = hidden // H
    G = hidden // S                      # merged row = G consecutive rows of U
    BB = x_ref.shape[0] // S

    # ---- fused QKV projection over all BB*S rows (bf16 operands, f32 accum) ----
    x = x_ref[...].astype(jnp.bfloat16)
    q = jnp.dot(x, wq_ref[...], preferred_element_type=jnp.float32) + bq_ref[...]
    k = jnp.dot(x, wk_ref[...], preferred_element_type=jnp.float32) + bk_ref[...]
    v = jnp.dot(x, wv_ref[...], preferred_element_type=jnp.float32) + bv_ref[...]

    # torch divides scores by sqrt(k.size(-1)) == sqrt(S); fold it into q once
    # instead of scaling the (H, S, S) score tensor.
    q = (q * (1.0 / math.sqrt(S))).astype(jnp.bfloat16)
    k = k.astype(jnp.bfloat16)
    v = v.astype(jnp.bfloat16)

    merged_blocks = []
    for b in range(BB):                  # tiny static loop over the batch block
        rows = slice(b * S, (b + 1) * S)
        # Head-batched (H, S, Dh) views built from static slices.
        qh = jnp.stack([q[rows, h * Dh:(h + 1) * Dh] for h in range(H)], axis=0)
        kh = jnp.stack([k[rows, h * Dh:(h + 1) * Dh] for h in range(H)], axis=0)
        vh = jnp.stack([v[rows, h * Dh:(h + 1) * Dh] for h in range(H)], axis=0)

        # Scores for all heads at once; contraction over head_dim (no explicit .T).
        scores = jnp.einsum("hqd,hkd->hqk", qh, kh,
                            preferred_element_type=jnp.float32)       # (H, S, S)

        m = mask_ref[b, 0]                                            # (S, S)
        scores = jnp.where(m[None, :, :] > 0.5, jnp.float32(-1e9), scores)

        # f32 softmax along the last axis.
        scores = scores - jnp.max(scores, axis=-1, keepdims=True)
        p = jnp.exp(scores)
        p = p * pl.reciprocal(jnp.sum(p, axis=-1, keepdims=True), approx=True)

        ctx = jnp.einsum("hqk,hkd->hqd", p.astype(jnp.bfloat16), vh,
                         preferred_element_type=jnp.float32)          # (H, S, Dh)

        # Literal torch merge: (H,S,Dh) --transpose(2,3)--> (H,Dh,S) --view--> (S,hidden).
        # U[h*Dh+d, s] = ctx[h, s, d]; row g*S+i of (perm @ U) is row i*G+g of U, so
        # lane-concatenating the G row-blocks of (perm @ U) gives exactly the row-major
        # reshape of the (H, Dh, S) tensor — using only MXU + static slices + concat.
        U = jnp.concatenate([ctx[h].T for h in range(H)], axis=0).astype(jnp.bfloat16)
        pu = jnp.dot(perm_ref[...], U, preferred_element_type=jnp.float32)  # (hidden, S)
        merged_b = jnp.concatenate(
            [pu[g * S:(g + 1) * S, :] for g in range(G)], axis=1)           # (S, hidden)
        merged_blocks.append(merged_b)

    merged = (jnp.concatenate(merged_blocks, axis=0)
              if BB > 1 else merged_blocks[0])                              # (BB*S, hidden)

    # ---- fused output projection, lane-dense (rows, E) store ----
    out = (jnp.dot(merged.astype(jnp.bfloat16), wo_ref[...],
                   preferred_element_type=jnp.float32) + bo_ref[...])
    out_ref[...] = out.astype(out_ref.dtype)


def multi_head_attention(x, mask, params, n_heads, *, batch_block=None):
    B, S, E = x.shape
    hidden = params["wq"].shape[1]
    assert hidden % n_heads == 0
    # The fused literal head-merge path needs seq_len | hidden (holds for the toy shapes).
    assert hidden % S == 0, "fused head-merge path requires seq_len to divide hidden"
    G = hidden // S

    bb = B if batch_block is None else batch_block
    assert B % bb == 0

    # Compact mask: (B, 1, S, S) float32, reused across all heads in-kernel.
    mask_f = mask.astype(jnp.float32)

    # 0/1 permutation matrix realizing the literal `.transpose(2,3).view(B,S,-1)` merge:
    # row (g*S + i) of perm selects row (i*G + g) of U.
    r = jnp.arange(hidden)[:, None]
    c = jnp.arange(hidden)[None, :]
    perm = (((r % S) * G + (r // S)) == c).astype(jnp.bfloat16)

    # bf16 weights for the MXU (f32 accumulation in-kernel); biases stay f32.
    wq = params["wq"].astype(jnp.bfloat16)
    wk = params["wk"].astype(jnp.bfloat16)
    wv = params["wv"].astype(jnp.bfloat16)
    wo = params["wo"].astype(jnp.bfloat16)

    # Fold (B, S) into one M dimension so the QKV / output matmuls see B*S rows.
    x2 = x.reshape(B * S, E)

    out = pl.pallas_call(
        functools.partial(_mha_kernel, n_heads=n_heads, seq_len=S),
        out_shape=jax.ShapeDtypeStruct((B * S, E), jnp.float32),
        grid=(B // bb,),
        in_specs=[
            pl.BlockSpec((bb * S, E), lambda i: (i, 0)),            # x rows
            pl.BlockSpec((bb, 1, S, S), lambda i: (i, 0, 0, 0)),    # mask (no H broadcast)
            pl.BlockSpec((hidden, hidden), lambda i: (0, 0)),       # merge permutation
            pl.BlockSpec((E, hidden), lambda i: (0, 0)),            # Wq
            pl.BlockSpec((1, hidden), lambda i: (0, 0)),            # bq
            pl.BlockSpec((E, hidden), lambda i: (0, 0)),            # Wk
            pl.BlockSpec((1, hidden), lambda i: (0, 0)),            # bk
            pl.BlockSpec((E, hidden), lambda i: (0, 0)),            # Wv
            pl.BlockSpec((1, hidden), lambda i: (0, 0)),            # bv
            pl.BlockSpec((hidden, E), lambda i: (0, 0)),            # Wo
            pl.BlockSpec((1, E), lambda i: (0, 0)),                 # bo
        ],
        out_specs=pl.BlockSpec((bb * S, E), lambda i: (i, 0)),
        compiler_params=pltpu.CompilerParams(
            dimension_semantics=("parallel",),
            vmem_limit_bytes=32 * 1024 * 1024),
    )(x2, mask_f, perm, wq, params["bq"], wk, params["bk"],
      wv, params["bv"], wo, params["bo"])

    return out.reshape(B, S, E)


def init_params(key, embedding_size, hidden):
    """Deterministic nn.Linear-style init. Weights stored pre-transposed as
    (in_features, out_features) so kernels compute x @ W + b (== torch x @ W.T + b)."""
    def linear(kw, kb, fan_in, fan_out):
        bound = 1.0 / math.sqrt(fan_in)
        w = jax.random.uniform(kw, (fan_in, fan_out), jnp.float32, -bound, bound)
        b = jax.random.uniform(kb, (1, fan_out), jnp.float32, -bound, bound)
        return w, b

    ks = jax.random.split(key, 8)
    wq, bq = linear(ks[0], ks[1], embedding_size, hidden)
    wk, bk = linear(ks[2], ks[3], embedding_size, hidden)
    wv, bv = linear(ks[4], ks[5], embedding_size, hidden)
    wo, bo = linear(ks[6], ks[7], hidden, embedding_size)
    return dict(wq=wq, bq=bq, wk=wk, bk=bk, wv=wv, bv=bv, wo=wo, bo=bo)


if __name__ == "__main__":
    B, S = 2, 8
    embedding_size, hidden, n_heads = 32, 32, 4

    root = jax.random.PRNGKey(0)
    k_params, k_x = jax.random.split(root)
    params = init_params(k_params, embedding_size, hidden)

    x = jax.random.normal(k_x, (B, S, embedding_size), jnp.float32)

    # Causal mask: True above the diagonal -> those scores are masked out.
    row = jnp.arange(S)
    causal = row[None, :] > row[:, None]                    # (S, S) bool
    mask = jnp.broadcast_to(causal[None, None], (B, 1, S, S))

    out = multi_head_attention(x, mask, params, n_heads)
    jax.block_until_ready(out)
    assert out.shape == (B, S, embedding_size)
    print("KERNEL_OK")
</pallas_src>

<mosaic_0001>
module attributes {stable_mosaic.version = 11 : i64} {
  func.func @_mha_kernel(%arg0: i32, %arg1: memref<16x32xf32, #tpu.memory_space<vmem>>, %arg2: memref<2x1x8x8xf32, #tpu.memory_space<vmem>>, %arg3: memref<32x32xbf16, #tpu.memory_space<vmem>>, %arg4: memref<32x32xbf16, #tpu.memory_space<vmem>>, %arg5: memref<1x32xf32, #tpu.memory_space<vmem>>, %arg6: memref<32x32xbf16, #tpu.memory_space<vmem>>, %arg7: memref<1x32xf32, #tpu.memory_space<vmem>>, %arg8: memref<32x32xbf16, #tpu.memory_space<vmem>>, %arg9: memref<1x32xf32, #tpu.memory_space<vmem>>, %arg10: memref<32x32xbf16, #tpu.memory_space<vmem>>, %arg11: memref<1x32xf32, #tpu.memory_space<vmem>>, %arg12: memref<16x32xf32, #tpu.memory_space<vmem>>) attributes {dimension_semantics = [#tpu.dimension_semantics<parallel>], iteration_bounds = array<i64: 1>, scalar_prefetch = 0 : i64, scratch_operands = 0 : i64, tpu.core_type = #tpu.core_type<tc>, window_params = [{transform_indices = @transform_0, window_bounds = array<i64: 16, 32>}, {transform_indices = @transform_1, window_bounds = array<i64: 2, 1, 8, 8>}, {pipeline_mode = #tpu.pipeline_mode<synchronous>, transform_indices = @transform_2, window_bounds = array<i64: 32, 32>}, {pipeline_mode = #tpu.pipeline_mode<synchronous>, transform_indices = @transform_3, window_bounds = array<i64: 32, 32>}, {pipeline_mode = #tpu.pipeline_mode<synchronous>, transform_indices = @transform_4, window_bounds = array<i64: 1, 32>}, {pipeline_mode = #tpu.pipeline_mode<synchronous>, transform_indices = @transform_5, window_bounds = array<i64: 32, 32>}, {pipeline_mode = #tpu.pipeline_mode<synchronous>, transform_indices = @transform_6, window_bounds = array<i64: 1, 32>}, {pipeline_mode = #tpu.pipeline_mode<synchronous>, transform_indices = @transform_7, window_bounds = array<i64: 32, 32>}, {pipeline_mode = #tpu.pipeline_mode<synchronous>, transform_indices = @transform_8, window_bounds = array<i64: 1, 32>}, {pipeline_mode = #tpu.pipeline_mode<synchronous>, transform_indices = @transform_9, window_bounds = array<i64: 32, 32>}, {pipeline_mode = #tpu.pipeline_mode<synchronous>, transform_indices = @transform_10, window_bounds = array<i64: 1, 32>}, {transform_indices = @transform_11, window_bounds = array<i64: 16, 32>}]} {
    %c0 = arith.constant 0 : index
    %c0_0 = arith.constant 0 : index
    %0 = vector.load %arg1[%c0, %c0_0] : memref<16x32xf32, #tpu.memory_space<vmem>>, vector<16x32xf32>
    %1 = arith.truncf %0 : vector<16x32xf32> to vector<16x32xbf16>
    %c0_1 = arith.constant 0 : index
    %c0_2 = arith.constant 0 : index
    %2 = vector.load %arg4[%c0_1, %c0_2] : memref<32x32xbf16, #tpu.memory_space<vmem>>, vector<32x32xbf16>
    %cst = arith.constant dense<0.000000e+00> : vector<16x32xf32>
    %3 = tpu.matmul %1, %2, %cst {dimension_numbers = #tpu.dot_dimension_numbers<[1], [0], [0], [1], [0, 0, 1, 1], [], []>} : vector<16x32xbf16>, vector<32x32xbf16>, vector<16x32xf32> -> vector<16x32xf32>
    %c0_3 = arith.constant 0 : index
    %c0_4 = arith.constant 0 : index
    %4 = vector.load %arg5[%c0_3, %c0_4] : memref<1x32xf32, #tpu.memory_space<vmem>>, vector<1x32xf32>
    %5 = vector.broadcast %4 : vector<1x32xf32> to vector<16x32xf32>
    %6 = arith.addf %3, %5 : vector<16x32xf32>
    %c0_5 = arith.constant 0 : index
    %c0_6 = arith.constant 0 : index
    %7 = vector.load %arg6[%c0_5, %c0_6] : memref<32x32xbf16, #tpu.memory_space<vmem>>, vector<32x32xbf16>
    %cst_7 = arith.constant dense<0.000000e+00> : vector<16x32xf32>
    %8 = tpu.matmul %1, %7, %cst_7 {dimension_numbers = #tpu.dot_dimension_numbers<[1], [0], [0], [1], [0, 0, 1, 1], [], []>} : vector<16x32xbf16>, vector<32x32xbf16>, vector<16x32xf32> -> vector<16x32xf32>
    %c0_8 = arith.constant 0 : index
    %c0_9 = arith.constant 0 : index
    %9 = vector.load %arg7[%c0_8, %c0_9] : memref<1x32xf32, #tpu.memory_space<vmem>>, vector<1x32xf32>
    %10 = vector.broadcast %9 : vector<1x32xf32> to vector<16x32xf32>
    %11 = arith.addf %8, %10 : vector<16x32xf32>
    %c0_10 = arith.constant 0 : index
    %c0_11 = arith.constant 0 : index
    %12 = vector.load %arg8[%c0_10, %c0_11] : memref<32x32xbf16, #tpu.memory_space<vmem>>, vector<32x32xbf16>
    %cst_12 = arith.constant dense<0.000000e+00> : vector<16x32xf32>
    %13 = tpu.matmul %1, %12, %cst_12 {dimension_numbers = #tpu.dot_dimension_numbers<[1], [0], [0], [1], [0, 0, 1, 1], [], []>} : vector<16x32xbf16>, vector<32x32xbf16>, vector<16x32xf32> -> vector<16x32xf32>
    %c0_13 = arith.constant 0 : index
    %c0_14 = arith.constant 0 : index
    %14 = vector.load %arg9[%c0_13, %c0_14] : memref<1x32xf32, #tpu.memory_space<vmem>>, vector<1x32xf32>
    %15 = vector.broadcast %14 : vector<1x32xf32> to vector<16x32xf32>
    %16 = arith.addf %13, %15 : vector<16x32xf32>
    %cst_15 = arith.constant 0.353553385 : f32
    %17 = vector.broadcast %cst_15 : f32 to vector<16x32xf32>
    %18 = arith.mulf %6, %17 : vector<16x32xf32>
    %19 = arith.truncf %18 : vector<16x32xf32> to vector<16x32xbf16>
    %20 = arith.truncf %11 : vector<16x32xf32> to vector<16x32xbf16>
    %21 = arith.truncf %16 : vector<16x32xf32> to vector<16x32xbf16>
    %22 = vector.extract_strided_slice %19 {offsets = [0, 0], sizes = [8, 8], strides = [1, 1]} : vector<16x32xbf16> to vector<8x8xbf16>
    %23 = vector.extract_strided_slice %19 {offsets = [0, 8], sizes = [8, 8], strides = [1, 1]} : vector<16x32xbf16> to vector<8x8xbf16>
    %24 = vector.extract_strided_slice %19 {offsets = [0, 16], sizes = [8, 8], strides = [1, 1]} : vector<16x32xbf16> to vector<8x8xbf16>
    %25 = vector.extract_strided_slice %19 {offsets = [0, 24], sizes = [8, 8], strides = [1, 1]} : vector<16x32xbf16> to vector<8x8xbf16>
    %26 = vector.shape_cast %22 : vector<8x8xbf16> to vector<1x8x8xbf16>
    %27 = vector.shape_cast %23 : vector<8x8xbf16> to vector<1x8x8xbf16>
    %28 = vector.shape_cast %24 : vector<8x8xbf16> to vector<1x8x8xbf16>
    %29 = vector.shape_cast %25 : vector<8x8xbf16> to vector<1x8x8xbf16>
    %30 = tpu.concatenate %26, %27, %28, %29 in 0 : vector<1x8x8xbf16>, vector<1x8x8xbf16>, vector<1x8x8xbf16>, vector<1x8x8xbf16> -> vector<4x8x8xbf16>
    %31 = vector.extract_strided_slice %20 {offsets = [0, 0], sizes = [8, 8], strides = [1, 1]} : vector<16x32xbf16> to vector<8x8xbf16>
    %32 = vector.extract_strided_slice %20 {offsets = [0, 8], sizes = [8, 8], strides = [1, 1]} : vector<16x32xbf16> to vector<8x8xbf16>
    %33 = vector.extract_strided_slice %20 {offsets = [0, 16], sizes = [8, 8], strides = [1, 1]} : vector<16x32xbf16> to vector<8x8xbf16>
    %34 = vector.extract_strided_slice %20 {offsets = [0, 24], sizes = [8, 8], strides = [1, 1]} : vector<16x32xbf16> to vector<8x8xbf16>
    %35 = vector.shape_cast %31 : vector<8x8xbf16> to vector<1x8x8xbf16>
    %36 = vector.shape_cast %32 : vector<8x8xbf16> to vector<1x8x8xbf16>
    %37 = vector.shape_cast %33 : vector<8x8xbf16> to vector<1x8x8xbf16>
    %38 = vector.shape_cast %34 : vector<8x8xbf16> to vector<1x8x8xbf16>
    %39 = tpu.concatenate %35, %36, %37, %38 in 0 : vector<1x8x8xbf16>, vector<1x8x8xbf16>, vector<1x8x8xbf16>, vector<1x8x8xbf16> -> vector<4x8x8xbf16>
    %40 = vector.extract_strided_slice %21 {offsets = [0, 0], sizes = [8, 8], strides = [1, 1]} : vector<16x32xbf16> to vector<8x8xbf16>
    %41 = vector.extract_strided_slice %21 {offsets = [0, 8], sizes = [8, 8], strides = [1, 1]} : vector<16x32xbf16> to vector<8x8xbf16>
    %42 = vector.extract_strided_slice %21 {offsets = [0, 16], sizes = [8, 8], strides = [1, 1]} : vector<16x32xbf16> to vector<8x8xbf16>
    %43 = vector.extract_strided_slice %21 {offsets = [0, 24], sizes = [8, 8], strides = [1, 1]} : vector<16x32xbf16> to vector<8x8xbf16>
    %44 = vector.shape_cast %40 : vector<8x8xbf16> to vector<1x8x8xbf16>
    %45 = vector.shape_cast %41 : vector<8x8xbf16> to vector<1x8x8xbf16>
    %46 = vector.shape_cast %42 : vector<8x8xbf16> to vector<1x8x8xbf16>
    %47 = vector.shape_cast %43 : vector<8x8xbf16> to vector<1x8x8xbf16>
    %48 = tpu.concatenate %44, %45, %46, %47 in 0 : vector<1x8x8xbf16>, vector<1x8x8xbf16>, vector<1x8x8xbf16>, vector<1x8x8xbf16> -> vector<4x8x8xbf16>
    "tpu.trace_start"() <{level = 10 : i32, message = "hqd,hkd->hqk"}> : () -> ()
    %cst_16 = arith.constant dense<0.000000e+00> : vector<4x8x8xf32>
    %49 = tpu.matmul %30, %39, %cst_16 {dimension_numbers = #tpu.dot_dimension_numbers<[2], [2], [1], [1], [0, 0, 0, 1, 1, 1], [0], [0]>} : vector<4x8x8xbf16>, vector<4x8x8xbf16>, vector<4x8x8xf32> -> vector<4x8x8xf32>
    "tpu.trace_stop"() : () -> ()
    %c0_17 = arith.constant 0 : index
    %c0_18 = arith.constant 0 : index
    %c0_19 = arith.constant 0 : index
    %c0_20 = arith.constant 0 : index
    %50 = vector.load %arg2[%c0_17, %c0_18, %c0_19, %c0_20] : memref<2x1x8x8xf32, #tpu.memory_space<vmem>>, vector<1x1x8x8xf32>
    %51 = vector.shape_cast %50 : vector<1x1x8x8xf32> to vector<8x8xf32>
    %52 = vector.shape_cast %51 : vector<8x8xf32> to vector<1x8x8xf32>
    %cst_21 = arith.constant 5.000000e-01 : f32
    %53 = vector.broadcast %cst_21 : f32 to vector<1x8x8xf32>
    %54 = arith.cmpf ogt, %52, %53 : vector<1x8x8xf32>
    %cst_22 = arith.constant -1.000000e+09 : f32
    %55 = vector.shape_cast %54 : vector<1x8x8xi1> to vector<1x8x8xi1>
    %56 = vector.broadcast %55 : vector<1x8x8xi1> to vector<4x8x8xi1>
    %57 = vector.broadcast %cst_22 : f32 to vector<4x8x8xf32>
    %58 = arith.select %56, %57, %49 : vector<4x8x8xi1>, vector<4x8x8xf32>
    %cst_23 = arith.constant dense<0xFF800000> : vector<4x8xf32>
    %59 = vector.multi_reduction <maximumf>, %58, %cst_23 [2] : vector<4x8x8xf32> to vector<4x8xf32>
    %60 = vector.shape_cast %59 : vector<4x8xf32> to vector<4x8x1xf32>
    %61 = vector.broadcast %60 : vector<4x8x1xf32> to vector<4x8x8xf32>
    %62 = arith.subf %58, %61 : vector<4x8x8xf32>
    %63 = math.exp %62 : vector<4x8x8xf32>
    %cst_24 = arith.constant dense<0.000000e+00> : vector<4x8xf32>
    %64 = vector.multi_reduction <add>, %63, %cst_24 [2] : vector<4x8x8xf32> to vector<4x8xf32>
    %65 = vector.shape_cast %64 : vector<4x8xf32> to vector<4x8x1xf32>
    %66 = tpu.reciprocal %65 {approx = true} : vector<4x8x1xf32> -> vector<4x8x1xf32>
    %67 = vector.broadcast %66 : vector<4x8x1xf32> to vector<4x8x8xf32>
    %68 = arith.mulf %63, %67 : vector<4x8x8xf32>
    %69 = arith.truncf %68 : vector<4x8x8xf32> to vector<4x8x8xbf16>
    "tpu.trace_start"() <{level = 10 : i32, message = "hqk,hkd->hqd"}> : () -> ()
    %cst_25 = arith.constant dense<0.000000e+00> : vector<4x8x8xf32>
    %70 = tpu.matmul %69, %48, %cst_25 {dimension_numbers = #tpu.dot_dimension_numbers<[2], [1], [1], [2], [0, 0, 0, 1, 1, 2], [0], [0]>} : vector<4x8x8xbf16>, vector<4x8x8xbf16>, vector<4x8x8xf32> -> vector<4x8x8xf32>
    "tpu.trace_stop"() : () -> ()
    %71 = vector.extract_strided_slice %70 {offsets = [0, 0, 0], sizes = [1, 8, 8], strides = [1, 1, 1]} : vector<4x8x8xf32> to vector<1x8x8xf32>
    %72 = vector.shape_cast %71 : vector<1x8x8xf32> to vector<8x8xf32>
    %73 = tpu.transpose %72, [1, 0] : vector<8x8xf32> -> vector<8x8xf32>
    %74 = vector.extract_strided_slice %70 {offsets = [1, 0, 0], sizes = [1, 8, 8], strides = [1, 1, 1]} : vector<4x8x8xf32> to vector<1x8x8xf32>
    %75 = vector.shape_cast %74 : vector<1x8x8xf32> to vector<8x8xf32>
    %76 = tpu.transpose %75, [1, 0] : vector<8x8xf32> -> vector<8x8xf32>
    %77 = vector.extract_strided_slice %70 {offsets = [2, 0, 0], sizes = [1, 8, 8], strides = [1, 1, 1]} : vector<4x8x8xf32> to vector<1x8x8xf32>
    %78 = vector.shape_cast %77 : vector<1x8x8xf32> to vector<8x8xf32>
    %79 = tpu.transpose %78, [1, 0] : vector<8x8xf32> -> vector<8x8xf32>
    %80 = vector.extract_strided_slice %70 {offsets = [3, 0, 0], sizes = [1, 8, 8], strides = [1, 1, 1]} : vector<4x8x8xf32> to vector<1x8x8xf32>
    %81 = vector.shape_cast %80 : vector<1x8x8xf32> to vector<8x8xf32>
    %82 = tpu.transpose %81, [1, 0] : vector<8x8xf32> -> vector<8x8xf32>
    %83 = tpu.concatenate %73, %76, %79, %82 in 0 : vector<8x8xf32>, vector<8x8xf32>, vector<8x8xf32>, vector<8x8xf32> -> vector<32x8xf32>
    %84 = arith.truncf %83 : vector<32x8xf32> to vector<32x8xbf16>
    %c0_26 = arith.constant 0 : index
    %c0_27 = arith.constant 0 : index
    %85 = vector.load %arg3[%c0_26, %c0_27] : memref<32x32xbf16, #tpu.memory_space<vmem>>, vector<32x32xbf16>
    %cst_28 = arith.constant dense<0.000000e+00> : vector<32x8xf32>
    %86 = tpu.matmul %85, %84, %cst_28 {dimension_numbers = #tpu.dot_dimension_numbers<[1], [0], [0], [1], [0, 0, 1, 1], [], []>} : vector<32x32xbf16>, vector<32x8xbf16>, vector<32x8xf32> -> vector<32x8xf32>
    %87 = vector.extract_strided_slice %86 {offsets = [0, 0], sizes = [8, 8], strides = [1, 1]} : vector<32x8xf32> to vector<8x8xf32>
    %88 = vector.extract_strided_slice %86 {offsets = [8, 0], sizes = [8, 8], strides = [1, 1]} : vector<32x8xf32> to vector<8x8xf32>
    %89 = vector.extract_strided_slice %86 {offsets = [16, 0], sizes = [8, 8], strides = [1, 1]} : vector<32x8xf32> to vector<8x8xf32>
    %90 = vector.extract_strided_slice %86 {offsets = [24, 0], sizes = [8, 8], strides = [1, 1]} : vector<32x8xf32> to vector<8x8xf32>
    %91 = tpu.concatenate %87, %88, %89, %90 in 1 : vector<8x8xf32>, vector<8x8xf32>, vector<8x8xf32>, vector<8x8xf32> -> vector<8x32xf32>
    %92 = vector.extract_strided_slice %19 {offsets = [8, 0], sizes = [8, 8], strides = [1, 1]} : vector<16x32xbf16> to vector<8x8xbf16>
    %93 = vector.extract_strided_slice %19 {offsets = [8, 8], sizes = [8, 8], strides = [1, 1]} : vector<16x32xbf16> to vector<8x8xbf16>
    %94 = vector.extract_strided_slice %19 {offsets = [8, 16], sizes = [8, 8], strides = [1, 1]} : vector<16x32xbf16> to vector<8x8xbf16>
    %95 = vector.extract_strided_slice %19 {offsets = [8, 24], sizes = [8, 8], strides = [1, 1]} : vector<16x32xbf16> to vector<8x8xbf16>
    %96 = vector.shape_cast %92 : vector<8x8xbf16> to vector<1x8x8xbf16>
    %97 = vector.shape_cast %93 : vector<8x8xbf16> to vector<1x8x8xbf16>
    %98 = vector.shape_cast %94 : vector<8x8xbf16> to vector<1x8x8xbf16>
    %99 = vector.shape_cast %95 : vector<8x8xbf16> to vector<1x8x8xbf16>
    %100 = tpu.concatenate %96, %97, %98, %99 in 0 : vector<1x8x8xbf16>, vector<1x8x8xbf16>, vector<1x8x8xbf16>, vector<1x8x8xbf16> -> vector<4x8x8xbf16>
    %101 = vector.extract_strided_slice %20 {offsets = [8, 0], sizes = [8, 8], strides = [1, 1]} : vector<16x32xbf16> to vector<8x8xbf16>
    %102 = vector.extract_strided_slice %20 {offsets = [8, 8], sizes = [8, 8], strides = [1, 1]} : vector<16x32xbf16> to vector<8x8xbf16>
    %103 = vector.extract_strided_slice %20 {offsets = [8, 16], sizes = [8, 8], strides = [1, 1]} : vector<16x32xbf16> to vector<8x8xbf16>
    %104 = vector.extract_strided_slice %20 {offsets = [8, 24], sizes = [8, 8], strides = [1, 1]} : vector<16x32xbf16> to vector<8x8xbf16>
    %105 = vector.shape_cast %101 : vector<8x8xbf16> to vector<1x8x8xbf16>
    %106 = vector.shape_cast %102 : vector<8x8xbf16> to vector<1x8x8xbf16>
    %107 = vector.shape_cast %103 : vector<8x8xbf16> to vector<1x8x8xbf16>
    %108 = vector.shape_cast %104 : vector<8x8xbf16> to vector<1x8x8xbf16>
    %109 = tpu.concatenate %105, %106, %107, %108 in 0 : vector<1x8x8xbf16>, vector<1x8x8xbf16>, vector<1x8x8xbf16>, vector<1x8x8xbf16> -> vector<4x8x8xbf16>
    %110 = vector.extract_strided_slice %21 {offsets = [8, 0], sizes = [8, 8], strides = [1, 1]} : vector<16x32xbf16> to vector<8x8xbf16>
    %111 = vector.extract_strided_slice %21 {offsets = [8, 8], sizes = [8, 8], strides = [1, 1]} : vector<16x32xbf16> to vector<8x8xbf16>
    %112 = vector.extract_strided_slice %21 {offsets = [8, 16], sizes = [8, 8], strides = [1, 1]} : vector<16x32xbf16> to vector<8x8xbf16>
    %113 = vector.extract_strided_slice %21 {offsets = [8, 24], sizes = [8, 8], strides = [1, 1]} : vector<16x32xbf16> to vector<8x8xbf16>
    %114 = vector.shape_cast %110 : vector<8x8xbf16> to vector<1x8x8xbf16>
    %115 = vector.shape_cast %111 : vector<8x8xbf16> to vector<1x8x8xbf16>
    %116 = vector.shape_cast %112 : vector<8x8xbf16> to vector<1x8x8xbf16>
    %117 = vector.shape_cast %113 : vector<8x8xbf16> to vector<1x8x8xbf16>
    %118 = tpu.concatenate %114, %115, %116, %117 in 0 : vector<1x8x8xbf16>, vector<1x8x8xbf16>, vector<1x8x8xbf16>, vector<1x8x8xbf16> -> vector<4x8x8xbf16>
    "tpu.trace_start"() <{level = 10 : i32, message = "hqd,hkd->hqk"}> : () -> ()
    %cst_29 = arith.constant dense<0.000000e+00> : vector<4x8x8xf32>
    %119 = tpu.matmul %100, %109, %cst_29 {dimension_numbers = #tpu.dot_dimension_numbers<[2], [2], [1], [1], [0, 0, 0, 1, 1, 1], [0], [0]>} : vector<4x8x8xbf16>, vector<4x8x8xbf16>, vector<4x8x8xf32> -> vector<4x8x8xf32>
    "tpu.trace_stop"() : () -> ()
    %c1 = arith.constant 1 : index
    %c0_30 = arith.constant 0 : index
    %c0_31 = arith.constant 0 : index
    %c0_32 = arith.constant 0 : index
    %120 = vector.load %arg2[%c1, %c0_30, %c0_31, %c0_32] : memref<2x1x8x8xf32, #tpu.memory_space<vmem>>, vector<1x1x8x8xf32>
    %121 = vector.shape_cast %120 : vector<1x1x8x8xf32> to vector<8x8xf32>
    %122 = vector.shape_cast %121 : vector<8x8xf32> to vector<1x8x8xf32>
    %cst_33 = arith.constant 5.000000e-01 : f32
    %123 = vector.broadcast %cst_33 : f32 to vector<1x8x8xf32>
    %124 = arith.cmpf ogt, %122, %123 : vector<1x8x8xf32>
    %cst_34 = arith.constant -1.000000e+09 : f32
    %125 = vector.shape_cast %124 : vector<1x8x8xi1> to vector<1x8x8xi1>
    %126 = vector.broadcast %125 : vector<1x8x8xi1> to vector<4x8x8xi1>
    %127 = vector.broadcast %cst_34 : f32 to vector<4x8x8xf32>
    %128 = arith.select %126, %127, %119 : vector<4x8x8xi1>, vector<4x8x8xf32>
    %cst_35 = arith.constant dense<0xFF800000> : vector<4x8xf32>
    %129 = vector.multi_reduction <maximumf>, %128, %cst_35 [2] : vector<4x8x8xf32> to vector<4x8xf32>
    %130 = vector.shape_cast %129 : vector<4x8xf32> to vector<4x8x1xf32>
    %131 = vector.broadcast %130 : vector<4x8x1xf32> to vector<4x8x8xf32>
    %132 = arith.subf %128, %131 : vector<4x8x8xf32>
    %133 = math.exp %132 : vector<4x8x8xf32>
    %cst_36 = arith.constant dense<0.000000e+00> : vector<4x8xf32>
    %134 = vector.multi_reduction <add>, %133, %cst_36 [2] : vector<4x8x8xf32> to vector<4x8xf32>
    %135 = vector.shape_cast %134 : vector<4x8xf32> to vector<4x8x1xf32>
    %136 = tpu.reciprocal %135 {approx = true} : vector<4x8x1xf32> -> vector<4x8x1xf32>
    %137 = vector.broadcast %136 : vector<4x8x1xf32> to vector<4x8x8xf32>
    %138 = arith.mulf %133, %137 : vector<4x8x8xf32>
    %139 = arith.truncf %138 : vector<4x8x8xf32> to vector<4x8x8xbf16>
    "tpu.trace_start"() <{level = 10 : i32, message = "hqk,hkd->hqd"}> : () -> ()
    %cst_37 = arith.constant dense<0.000000e+00> : vector<4x8x8xf32>
    %140 = tpu.matmul %139, %118, %cst_37 {dimension_numbers = #tpu.dot_dimension_numbers<[2], [1], [1], [2], [0, 0, 0, 1, 1, 2], [0], [0]>} : vector<4x8x8xbf16>, vector<4x8x8xbf16>, vector<4x8x8xf32> -> vector<4x8x8xf32>
    "tpu.trace_stop"() : () -> ()
    %141 = vector.extract_strided_slice %140 {offsets = [0, 0, 0], sizes = [1, 8, 8], strides = [1, 1, 1]} : vector<4x8x8xf32> to vector<1x8x8xf32>
    %142 = vector.shape_cast %141 : vector<1x8x8xf32> to vector<8x8xf32>
    %143 = tpu.transpose %142, [1, 0] : vector<8x8xf32> -> vector<8x8xf32>
    %144 = vector.extract_strided_slice %140 {offsets = [1, 0, 0], sizes = [1, 8, 8], strides = [1, 1, 1]} : vector<4x8x8xf32> to vector<1x8x8xf32>
    %145 = vector.shape_cast %144 : vector<1x8x8xf32> to vector<8x8xf32>
    %146 = tpu.transpose %145, [1, 0] : vector<8x8xf32> -> vector<8x8xf32>
    %147 = vector.extract_strided_slice %140 {offsets = [2, 0, 0], sizes = [1, 8, 8], strides = [1, 1, 1]} : vector<4x8x8xf32> to vector<1x8x8xf32>
    %148 = vector.shape_cast %147 : vector<1x8x8xf32> to vector<8x8xf32>
    %149 = tpu.transpose %148, [1, 0] : vector<8x8xf32> -> vector<8x8xf32>
    %150 = vector.extract_strided_slice %140 {offsets = [3, 0, 0], sizes = [1, 8, 8], strides = [1, 1, 1]} : vector<4x8x8xf32> to vector<1x8x8xf32>
    %151 = vector.shape_cast %150 : vector<1x8x8xf32> to vector<8x8xf32>
    %152 = tpu.transpose %151, [1, 0] : vector<8x8xf32> -> vector<8x8xf32>
    %153 = tpu.concatenate %143, %146, %149, %152 in 0 : vector<8x8xf32>, vector<8x8xf32>, vector<8x8xf32>, vector<8x8xf32> -> vector<32x8xf32>
    %154 = arith.truncf %153 : vector<32x8xf32> to vector<32x8xbf16>
    %c0_38 = arith.constant 0 : index
    %c0_39 = arith.constant 0 : index
    %155 = vector.load %arg3[%c0_38, %c0_39] : memref<32x32xbf16, #tpu.memory_space<vmem>>, vector<32x32xbf16>
    %cst_40 = arith.constant dense<0.000000e+00> : vector<32x8xf32>
    %156 = tpu.matmul %155, %154, %cst_40 {dimension_numbers = #tpu.dot_dimension_numbers<[1], [0], [0], [1], [0, 0, 1, 1], [], []>} : vector<32x32xbf16>, vector<32x8xbf16>, vector<32x8xf32> -> vector<32x8xf32>
    %157 = vector.extract_strided_slice %156 {offsets = [0, 0], sizes = [8, 8], strides = [1, 1]} : vector<32x8xf32> to vector<8x8xf32>
    %158 = vector.extract_strided_slice %156 {offsets = [8, 0], sizes = [8, 8], strides = [1, 1]} : vector<32x8xf32> to vector<8x8xf32>
    %159 = vector.extract_strided_slice %156 {offsets = [16, 0], sizes = [8, 8], strides = [1, 1]} : vector<32x8xf32> to vector<8x8xf32>
    %160 = vector.extract_strided_slice %156 {offsets = [24, 0], sizes = [8, 8], strides = [1, 1]} : vector<32x8xf32> to vector<8x8xf32>
    %161 = tpu.concatenate %157, %158, %159, %160 in 1 : vector<8x8xf32>, vector<8x8xf32>, vector<8x8xf32>, vector<8x8xf32> -> vector<8x32xf32>
    %162 = tpu.concatenate %91, %161 in 0 : vector<8x32xf32>, vector<8x32xf32> -> vector<16x32xf32>
    %163 = arith.truncf %162 : vector<16x32xf32> to vector<16x32xbf16>
    %c0_41 = arith.constant 0 : index
    %c0_42 = arith.constant 0 : index
    %164 = vector.load %arg10[%c0_41, %c0_42] : memref<32x32xbf16, #tpu.memory_space<vmem>>, vector<32x32xbf16>
    %cst_43 = arith.constant dense<0.000000e+00> : vector<16x32xf32>
    %165 = tpu.matmul %163, %164, %cst_43 {dimension_numbers = #tpu.dot_dimension_numbers<[1], [0], [0], [1], [0, 0, 1, 1], [], []>} : vector<16x32xbf16>, vector<32x32xbf16>, vector<16x32xf32> -> vector<16x32xf32>
    %c0_44 = arith.constant 0 : index
    %c0_45 = arith.constant 0 : index
    %166 = vector.load %arg11[%c0_44, %c0_45] : memref<1x32xf32, #tpu.memory_space<vmem>>, vector<1x32xf32>
    %167 = vector.broadcast %166 : vector<1x32xf32> to vector<16x32xf32>
    %168 = arith.addf %165, %167 : vector<16x32xf32>
    %c0_46 = arith.constant 0 : index
    %c0_47 = arith.constant 0 : index
    %169 = vector.load %arg12[%c0_46, %c0_47] : memref<16x32xf32, #tpu.memory_space<vmem>>, vector<16x32xf32>
    tpu.vector_store %arg12[%c0_46, %c0_47], %168 {strides = array<i32>} : memref<16x32xf32, #tpu.memory_space<vmem>>, vector<16x32xf32>,
    return
  }
  func.func @transform_0(%arg0: i32) -> (i32, i32) {
    %c0_i32 = arith.constant 0 : i32
    %c0_i32_0 = arith.constant 0 : i32
    return %arg0, %c0_i32 : i32, i32
  }
  func.func @transform_1(%arg0: i32) -> (i32, i32, i32, i32) {
    %c0_i32 = arith.constant 0 : i32
    %c0_i32_0 = arith.constant 0 : i32
    %c0_i32_1 = arith.constant 0 : i32
    %c0_i32_2 = arith.constant 0 : i32
    return %arg0, %c0_i32, %c0_i32_0, %c0_i32_1 : i32, i32, i32, i32
  }
  func.func @transform_2(%arg0: i32) -> (i32, i32) {
    %c0_i32 = arith.constant 0 : i32
    %c0_i32_0 = arith.constant 0 : i32
    %c0_i32_1 = arith.constant 0 : i32
    return %c0_i32, %c0_i32_0 : i32, i32
  }
  func.func @transform_3(%arg0: i32) -> (i32, i32) {
    %c0_i32 = arith.constant 0 : i32
    %c0_i32_0 = arith.constant 0 : i32
    %c0_i32_1 = arith.constant 0 : i32
    return %c0_i32, %c0_i32_0 : i32, i32
  }
  func.func @transform_4(%arg0: i32) -> (i32, i32) {
    %c0_i32 = arith.constant 0 : i32
    %c0_i32_0 = arith.constant 0 : i32
    %c0_i32_1 = arith.constant 0 : i32
    return %c0_i32, %c0_i32_0 : i32, i32
  }
  func.func @transform_5(%arg0: i32) -> (i32, i32) {
    %c0_i32 = arith.constant 0 : i32
    %c0_i32_0 = arith.constant 0 : i32
    %c0_i32_1 = arith.constant 0 : i32
    return %c0_i32, %c0_i32_0 : i32, i32
  }
  func.func @transform_6(%arg0: i32) -> (i32, i32) {
    %c0_i32 = arith.constant 0 : i32
    %c0_i32_0 = arith.constant 0 : i32
    %c0_i32_1 = arith.constant 0 : i32
    return %c0_i32, %c0_i32_0 : i32, i32
  }
  func.func @transform_7(%arg0: i32) -> (i32, i32) {
    %c0_i32 = arith.constant 0 : i32
    %c0_i32_0 = arith.constant 0 : i32
    %c0_i32_1 = arith.constant 0 : i32
    return %c0_i32, %c0_i32_0 : i32, i32
  }
  func.func @transform_8(%arg0: i32) -> (i32, i32) {
    %c0_i32 = arith.constant 0 : i32
    %c0_i32_0 = arith.constant 0 : i32
    %c0_i32_1 = arith.constant 0 : i32
    return %c0_i32, %c0_i32_0 : i32, i32
  }
  func.func @transform_9(%arg0: i32) -> (i32, i32) {
    %c0_i32 = arith.constant 0 : i32
    %c0_i32_0 = arith.constant 0 : i32
    %c0_i32_1 = arith.constant 0 : i32
    return %c0_i32, %c0_i32_0 : i32, i32
  }
  func.func @transform_10(%arg0: i32) -> (i32, i32) {
    %c0_i32 = arith.constant 0 : i32
    %c0_i32_0 = arith.constant 0 : i32
    %c0_i32_1 = arith.constant 0 : i32
    return %c0_i32, %c0_i32_0 : i32, i32
  }
  func.func @transform_11(%arg0: i32) -> (i32, i32) {
    %c0_i32 = arith.constant 0 : i32
    %c0_i32_0 = arith.constant 0 : i32
    return %arg0, %c0_i32 : i32, i32
  }
}

</mosaic_0001>

<bundles_post_ra>
// kernel: tpu_custom_call.1
= control target key start
LH: loop header
LB: loop body
LE: loop exit
PB: predicated region body
PF: predicated region fallthrough
CT: control target
= control target key end

     0   :  { %16 = vsyncpa [#allocation3], 0  ;;  %s2652_s0 = inlined_call_operand.hbm [shape: f32[16,32], index: 0, kind: input, shape index: {}]   ;;  %s2653_s1 = inlined_call_operand.hbm [shape: f32[2,1,8,8], index: 1, kind: input, shape index: {}]   ;;  %s2654_s2 = inlined_call_operand.hbm [shape: bf16[32,32], index: 2, kind: input, shape index: {}]   ;;  %s2655_s3 = inlined_call_operand.hbm [shape: bf16[32,32], index: 3, kind: input, shape index: {}]   ;;  %s2656_s4 = inlined_call_operand.vmem [shape: f32[1,32], index: 4, kind: input, shape index: {}]   ;;  %s2657_s5 = inlined_call_operand.vmem [shape: bf16[32,32], index: 5, kind: input, shape index: {}]   ;;  %s2658_s6 = inlined_call_operand.vmem [shape: f32[1,32], index: 6, kind: input, shape index: {}]   ;;  %s2659_s7 = inlined_call_operand.hbm [shape: bf16[32,32], index: 7, kind: input, shape index: {}]   ;;  %s2660_s8 = inlined_call_operand.hbm [shape: f32[1,32], index: 8, kind: input, shape index: {}]   ;;  %s2661_s9 = inlined_call_operand.vmem [shape: bf16[32,32], index: 9, kind: input, shape index: {}]   ;;  %s2662_s10 = inlined_call_operand.vmem [shape: f32[1,32], index: 10, kind: input, shape index: {}]   ;;  %s2663_s11 = inlined_call_operand.hbm [shape: f32[16,32], index: 11, kind: output, shape index: {}]  }
   0x1   :  { %17 = vsyncpa [#allocation6], 0 }
   0x2   :  { %18 = vsyncpa [#allocation9], 0 }
   0x3   :  { %19 = vsyncpa [#allocation12], 0 }
   0x4   :  { %20 = vsyncpa [#allocation4], 0  ;;  %s2233_s17 = smov [#allocation5]   ;;  %s2069_s21 = scalar_lea.hbm %s2653_s1, 256 }
   0x5   :  { %s38_s18 = sshll.u32 %s2233_s17, 4  ;;  %p2070_p0 = scmp.ne.s32.totalorder %s2653_s1, %s2069_s21  ;;  %s39_s18 = int_to_ptr.vmem [resolvable:$true] %s38_s18 }
   0x6   :  { %p2073_p1 = scmp.lt.u32.totalorder %s2069_s21, %s2653_s1 }
   0x8   :  { %p2075_p2 = pnand %p2073_p1, %p2070_p0 }
   0xa   :  { %2078 = shalt.err (!%p2075_p2)
}
   0xb   :  { %s2079_s26 = scalar_lea.vmem %s39_s18, 256  ;;  %p2084_p4 = scmp.lt.s32.totalorder %s39_s18, %s39_s18 }
   0xc   :  { %p2080_p3 = scmp.ne.s32.totalorder %s39_s18, %s2079_s26  ;;  %p2085_p5 = scmp.lt.s32.totalorder %s2079_s26, %s2079_s26 }
   0xe   :  { %p2086_p6 = por %p2085_p5, %p2084_p4 }
  0x10   :  { %p2087_p7 = pnand %p2086_p6, %p2080_p3 }
  0x12   :  { %2090 = shalt.err (!%p2087_p7)
}
  0x13   :  { %s2234_s27 = smov 128   ;;  %s2235_s28 = smov 8  }
  0x14   :  { %44 = dma.hbm_to_vmem [thread:$0]  %s2653_s1, 256, %s39_s18, [#allocation6], %s2234_s27, %s2234_s27, %s2235_s28  }
  0x15   :  { %s2236_s12 = smov [#allocation8]   ;;  %s2237_s14 = smov [#allocation2]  }
  0x16   :  { %s62_s13 = sshll.u32 %s2236_s12, 4  ;;  %s26_s15 = sshll.u32 %s2237_s14, 4  ;;  %s63_s13 = int_to_ptr.vmem [resolvable:$true] %s62_s13  ;;  %s27_s15 = int_to_ptr.vmem [resolvable:$true] %s26_s15 }
  0x17   :  { %s2091_s19 = scalar_lea.hbm %s2655_s3, 256 }
  0x18   :  { %p2092_p8 = scmp.ne.s32.totalorder %s2655_s3, %s2091_s19  ;;  %p2095_p9 = scmp.lt.u32.totalorder %s2091_s19, %s2655_s3 }
  0x1a   :  { %p2097_p10 = pnand %p2095_p9, %p2092_p8 }
  0x1c   :  { %2100 = shalt.err (!%p2097_p10)
}
  0x1d   :  { %s2101_s1 = scalar_lea.vmem %s63_s13, 256  ;;  %p2106_p12 = scmp.lt.s32.totalorder %s63_s13, %s63_s13 }
  0x1e   :  { %p2102_p11 = scmp.ne.s32.totalorder %s63_s13, %s2101_s1  ;;  %p2107_p13 = scmp.lt.s32.totalorder %s2101_s1, %s2101_s1 }
  0x20   :  { %p2108_p0 = por %p2107_p13, %p2106_p12 }
  0x22   :  { %p2109_p1 = pnand %p2108_p0, %p2102_p11 }
  0x24   :  { %2112 = shalt.err (!%p2109_p1)
}
  0x25   :  { %s2238_s18 = smov 64   ;;  %s2239_s24 = smov 4  }
  0x26   :  { %68 = dma.hbm_to_vmem [thread:$0]  %s2655_s3, 256, %s63_s13, [#allocation9], %s2238_s18, %s2238_s18, %s2239_s24  }
  0x27   :  { %s2113_s12 = scalar_lea.hbm %s2652_s0, 256 }
  0x28   :  { %p2114_p2 = scmp.ne.s32.totalorder %s2652_s0, %s2113_s12  ;;  %p2117_p3 = scmp.lt.u32.totalorder %s2113_s12, %s2652_s0 }
  0x2a   :  { %p2119_p4 = pnand %p2117_p3, %p2114_p2 }
  0x2c   :  { %2122 = shalt.err (!%p2119_p4)
}
  0x2d   :  { %s2123_s20 = scalar_lea.vmem %s27_s15, 256  ;;  %p2128_p6 = scmp.lt.s32.totalorder %s27_s15, %s27_s15 }
  0x2e   :  { %p2124_p5 = scmp.ne.s32.totalorder %s27_s15, %s2123_s20  ;;  %p2129_p7 = scmp.lt.s32.totalorder %s2123_s20, %s2123_s20 }
  0x30   :  { %p2130_p8 = por %p2129_p7, %p2128_p6 }
  0x32   :  { %p2131_p9 = pnand %p2130_p8, %p2124_p5 }
  0x34   :  { %2134 = shalt.err (!%p2131_p9)
}
  0x35   :  { %32 = dma.hbm_to_vmem [thread:$0]  %s2652_s0, 256, %s27_s15, [#allocation3], %s2234_s27, %s2234_s27, %s2235_s28  }
  0x36   :  { %s2240_s21 = smov [#allocation7]   ;;  %s2241_s23 = smov [#allocation10]  }
  0x37   :  { %s50_s22 = sshll.u32 %s2240_s21, 4  ;;  %s80_s1 = sshll.u32 %s2241_s23, 4  ;;  %s51_s22 = int_to_ptr.vmem [resolvable:$true] %s50_s22  ;;  %s81_s1 = int_to_ptr.vmem [resolvable:$true] %s80_s1 }
  0x38   :  { %s2135_s29 = scalar_lea.hbm %s2654_s2, 256 }
  0x39   :  { %p2136_p10 = scmp.ne.s32.totalorder %s2654_s2, %s2135_s29  ;;  %p2139_p11 = scmp.lt.u32.totalorder %s2135_s29, %s2654_s2 }
  0x3b   :  { %p2141_p12 = pnand %p2139_p11, %p2136_p10 }
  0x3d   :  { %2144 = shalt.err (!%p2141_p12)
}
  0x3e   :  { %s2145_s0 = scalar_lea.vmem %s51_s22, 256  ;;  %p2150_p0 = scmp.lt.s32.totalorder %s51_s22, %s51_s22 }
  0x3f   :  { %p2146_p13 = scmp.ne.s32.totalorder %s51_s22, %s2145_s0  ;;  %p2151_p1 = scmp.lt.s32.totalorder %s2145_s0, %s2145_s0 }
  0x41   :  { %p2152_p2 = por %p2151_p1, %p2150_p0 }
  0x43   :  { %p2153_p3 = pnand %p2152_p2, %p2146_p13 }
  0x45   :  { %2156 = shalt.err (!%p2153_p3)
}
  0x46   :  { %56 = dma.hbm_to_vmem [thread:$0]  %s2654_s2, 256, %s51_s22, [#allocation6], %s2238_s18, %s2238_s18, %s2239_s24  }
  0x47   :  { %s2157_s3 = scalar_lea.hbm %s2659_s7, 256 }
  0x48   :  { %p2158_p4 = scmp.ne.s32.totalorder %s2659_s7, %s2157_s3  ;;  %p2161_p5 = scmp.lt.u32.totalorder %s2157_s3, %s2659_s7 }
  0x4a   :  { %p2163_p6 = pnand %p2161_p5, %p2158_p4 }
  0x4c   :  { %2166 = shalt.err (!%p2163_p6)
}
  0x4d   :  { %s2167_s26 = scalar_lea.vmem %s81_s1, 256  ;;  %p2172_p8 = scmp.lt.s32.totalorder %s81_s1, %s81_s1 }
  0x4e   :  { %p2168_p7 = scmp.ne.s32.totalorder %s81_s1, %s2167_s26  ;;  %p2173_p9 = scmp.lt.s32.totalorder %s2167_s26, %s2167_s26 }
  0x50   :  { %p2174_p10 = por %p2173_p9, %p2172_p8 }
  0x52   :  { %p2175_p11 = pnand %p2174_p10, %p2168_p7 }
  0x54   :  { %2178 = shalt.err (!%p2175_p11)
}
  0x55   :  { %86 = dma.hbm_to_vmem [thread:$0]  %s2659_s7, 256, %s81_s1, [#allocation9], %s2238_s18, %s2238_s18, %s2239_s24  }
  0x56   :  { %s2242_s29 = smov [#allocation11]   ;;  %s2179_s16 = scalar_lea.hbm %s2660_s8, 16 }
  0x57   :  { %s93_s30 = sshll.u32 %s2242_s29, 4  ;;  %p2180_p12 = scmp.ne.s32.totalorder %s2660_s8, %s2179_s16  ;;  %s94_s30 = int_to_ptr.vmem [resolvable:$true] %s93_s30 }
  0x58   :  { %p2183_p13 = scmp.lt.u32.totalorder %s2179_s16, %s2660_s8 }
  0x5a   :  { %p2185_p0 = pnand %p2183_p13, %p2180_p12 }
  0x5c   :  { %2188 = shalt.err (!%p2185_p0)
}
  0x5d   :  { %s2189_s20 = scalar_lea.vmem %s94_s30, 16  ;;  %s2193_s7 = scalar_lea.vmem %s94_s30, 32 }
  0x5e   :  { %p2190_p1 = scmp.ne.s32.totalorder %s94_s30, %s2189_s20  ;;  %p2194_p2 = scmp.lt.s32.totalorder %s94_s30, %s94_s30 }
  0x5f   :  { %p2195_p3 = scmp.lt.s32.totalorder %s2193_s7, %s2189_s20 }
  0x61   :  { %p2196_p4 = por %p2195_p3, %p2194_p2 }
  0x63   :  { %p2197_p5 = pnand %p2196_p4, %p2190_p1 }
  0x65   :  { %2200 = shalt.err (!%p2197_p5)
}
  0x66   :  { %96 = dma.hbm_to_vmem [thread:$0]  %s2660_s8, 16, %s94_s30, [#allocation12]  }
  0x67   :  { %2223 = dma.done.wait [#allocation3], 256  }
  0x68   :  { %2224 = vsyncadd [#allocation3], 4294967040 }
  0x69   :  { %2225 = dma.done.wait [#allocation6], 512  }
  0x6a   :  { %2226 = vsyncadd [#allocation6], 4294966784 }
  0x6b   :  { %2227 = dma.done.wait [#allocation9], 512  }
  0x6c   :  { %2228 = vsyncadd [#allocation9], 4294966784 }
  0x6d   :  { %2229 = dma.done.wait [#allocation12], 16  }
  0x6e   :  { %2230 = vsyncadd [#allocation12], 4294967280  ;;  %v2243_v0 = vmov 0.0   ;;  %vm2244_vm0 = vmmov 0   ;;  %v2025_v1 = vld [vmem:[%s2657_s5] sm:$0xff]   ;;  %v2026_v2 = vld [vmem:[#allocation8] sm:$0xff]  }
  0x6f   :  { %1828 = vmatprep.subr.bf16.mxu1 %v2243_v0  ;;  %1820 = vmatprep.subr.bf16.mxu0 %v2243_v0  ;;  %v2027_v3 = vld [vmem:[%s2657_s5 + $0x8] sm:$0xff]   ;;  %v2028_v4 = vld [vmem:[#allocation8 + $0x8] sm:$0xff]   ;;  %v120_v5 = vld [vmem:[#allocation2] sm:$0xff]  ;;  %vm146_vm1 = vcmask 261120   ;;  %vm345_vm2 = vcmask 64512   ;;  %s2247_s26 = smov 104  }
  0x70   :  { %1832 = vmatprep.mubr.msk.bf16.mxu1 %vm2244_vm0, %v2243_v0  ;;  %1824 = vmatprep.mubr.msk.bf16.mxu0 %vm2244_vm0, %v2243_v0  ;;  %v121_v6 = vld [vmem:[#allocation2 + $0x8] sm:$0xff]  ;;  %v2029_v8 = vld [vmem:[#allocation10] sm:$0xff]   ;;  %v1736_v29 = vld [vmem:[#allocation11] ss:$0 sm:$0xff]  ;;  %vm589_vm3 = vcmask 1043456   ;;  %s2248_s12 = smov 16  }
  0x71   :  { %1829 = vmatpush3.bf16.msra.mxu1 %v2025_v1  ;;  %1821 = vmatpush3.bf16.msra.mxu0 %v2026_v2  ;;  %v122_v7 = vpack.c.bf16 %v121_v6, %v120_v5  ;;  %v2030_v9 = vld [vmem:[#allocation10 + $0x8] sm:$0xff]   ;;  %v1728_v10 = vld [vmem:[%s2656_s4] ss:$0 sm:$0xff]  ;;  %s2245_s4 = smov 112   ;;  %v530_v47 = vld [vmem:[#allocation5] sm:$0xff]  ;;  %s2249_s14 = smov 24  }
  0x72   :  { %1830 = vmatprep.subr.bf16.mxu1 %v2243_v0  ;;  %1822 = vmatprep.subr.bf16.mxu0 %v2243_v0  ;;  %v1732_v11 = vld [vmem:[%s2658_s6] ss:$0 sm:$0xff]  ;;  %s2246_s6 = smov 120   ;;  %vm531_vm4 = vcmp.gt.f32.partialorder %v530_v47, 0.5  ;;  %vm983_vm6 = vcmask 130048   ;;  %vm985_vm7 = vcmask 195584  }
  0x73   :  { %s2250_s0 = smov [#allocation13]  }
  0x74   :  { %s1713_s15 = sshll.u32 %s2250_s0, 4  ;;  %s1714_s15 = int_to_ptr.vmem [resolvable:$true] %s1713_s15 }
  0x75   :  { %1831 = vmatpush3.bf16.msra.mxu1 %v2027_v3  ;;  %1823 = vmatpush3.bf16.msra.mxu0 %v2028_v4  ;;  %s2201_s17 = scalar_lea.vmem %s1714_s15, 256  ;;  %p2206_p7 = scmp.lt.s32.totalorder %s1714_s15, %s1714_s15 }
  0x76   :  { %1844 = vmatprep.subr.bf16.mxu1 %v2243_v0  ;;  %1836 = vmatprep.subr.bf16.mxu0 %v2243_v0  ;;  %p2202_p6 = scmp.ne.s32.totalorder %s1714_s15, %s2201_s17  ;;  %p2207_p8 = scmp.lt.s32.totalorder %s2201_s17, %s2201_s17 }
  0x78   :  { %1833 = vmatmul.mubr.msk.bf16.vlgmr.msra.gmra.mrb[0].mxu1 %vm146_vm1, %v122_v7  ;;  %1825 = vmatmul.mubr.msk.bf16.vlgmr.msra.gmra.mrb[0].mxu0 %vm146_vm1, %v122_v7  ;;  %p2208_p9 = por %p2207_p8, %p2206_p7 }
  0x79   :  { %1846 = vmatprep.mubr.msk.bf16.mxu1 %vm2244_vm0, %v2243_v0  ;;  %1840 = vmatprep.mubr.msk.bf16.mxu0 %vm2244_vm0, %v2243_v0 }
  0x7a   :  { %1837 = vmatpush3.bf16.msra.mxu0 %v2029_v8  ;;  %p2209_p10 = pnand %p2208_p9, %p2202_p6 }
  0x7b   :  { %1838 = vmatprep.subr.bf16.mxu0 %v2243_v0 }
  0x7e   :  { %1839 = vmatpush3.bf16.msra.mxu0 %v2030_v9 }
  0x7f   :  { %1850 = vmatprep.subr.bf16.mxu0 %v2243_v0 }
  0x81   :  { %1841 = vmatmul.mubr.msk.bf16.vlgmr.msra.gmra.mrb[4].mxu0 %vm146_vm1, %v122_v7 }
  0x82   :  { %1852 = vmatprep.mubr.msk.bf16.mxu0 %vm2244_vm0, %v2243_v0 }
 0x14b   :  { %v248_v12 = vpop.f32.mrb[0].mxu1  ;;  %v184_v14 = vpop.f32.mrb[0].mxu0 }
 0x14c   :  { %v1834_v13 = vpop.f32.mrb[1].mxu1  ;;  %v185_v15 = vadd.f32 %v1728_v10, %v184_v14  ;;  %v1826_v17 = vpop.f32.mrb[1].mxu0  ;;  %v249_v18 = vadd.f32 %v1732_v11, %v248_v12 }
 0x14d   :  { %v251_v16 = vpop.f32.mrb[2].mxu1  ;;  %v187_v21 = vpop.f32.mrb[2].mxu0 }
 0x14e   :  { %v252_v19 = vadd.f32 %v1732_v11, %v251_v16  ;;  %v1835_v20 = vpop.f32.mrb[3].mxu1  ;;  %v319_v22 = vmul.f32 0.35355338, %v185_v15  ;;  %v188_v23 = vadd.f32 %v1728_v10, %v187_v21  ;;  %v1827_v24 = vpop.f32.mrb[3].mxu0 }
 0x150   :  { %v2431_v25 = vpack.c.bf16 %v252_v19, %v249_v18  ;;  %v320_v26 = vmul.f32 0.35355338, %v188_v23 }
 0x152   :  { %334 = vrot.lane.b32.xlu1 %v2431_v25, %s2245_s4  ;;  %332 = vrot.lane.b32.xlu0 %v2431_v25, %s2246_s6  ;;  %v350_v27 = vsel %vm345_vm2, %v2431_v25, 0  ;;  %v2439_v28 = vpack.c.bf16 %v320_v26, %v319_v22 }
 0x153   :  { %1845 = vmatpush3.bf16.xpose.msra.mxu1 %v350_v27 }
 0x154   :  { %1856 = vmatprep.subr.bf16.mxu1 %v2243_v0  ;;  %v312_v30 = vpop.f32.mrb[4].mxu0 }
 0x155   :  { %v313_v31 = vadd.f32 %v1736_v29, %v312_v30  ;;  %v1842_v32 = vpop.f32.mrb[5].mxu0 }
 0x156   :  { %336 = vrot.lane.b32.xlu1 %v2431_v25, %s2247_s26  ;;  %325 = vrot.lane.b32.xlu0 %v2439_v28, %s2246_s6  ;;  %v315_v33 = vpop.f32.mrb[6].mxu0 }
 0x157   :  { %v316_v34 = vadd.f32 %v1736_v29, %v315_v33  ;;  %v1843_v35 = vpop.f32.mrb[7].mxu0 }
 0x159   :  { %v2454_v36 = vpack.c.bf16 %v316_v34, %v313_v31 }
 0x15a   :  { %329 = vrot.lane.b32.xlu1 %v2439_v28, %s2247_s26  ;;  %327 = vrot.lane.b32.xlu0 %v2439_v28, %s2245_s4 }
 0x15b   :  { %1847 = vmatmul.mubr.msk.bf16.vlgmr.msra.gmra.mrb[4].mxu1 %vm345_vm2, %v2439_v28  ;;  %v591_v44 = vsel %vm589_vm3, %v2454_v36, 0 }
 0x15c   :  { %1858 = vmatprep.mubr.msk.bf16.mxu1 %vm2244_vm0, %v2243_v0 }
 0x1c4   :  { %v2456_v37 = vpop.permute.xlu1 %334  ;;  %v2458_v38 = vpop.permute.xlu0 %332 }
 0x1c5   :  { %v442_v39 = vsel %vm345_vm2, %v2456_v37, 0  ;;  %v396_v40 = vsel %vm345_vm2, %v2458_v38, 0 }
 0x1c6   :  { %1851 = vmatpush3.bf16.xpose.msra.mxu0 %v396_v40  ;;  %1857 = vmatpush3.bf16.xpose.msra.mxu1 %v442_v39 }
 0x1c7   :  { %1862 = vmatprep.subr.bf16.mxu0 %v2243_v0  ;;  %1868 = vmatprep.subr.bf16.mxu1 %v2243_v0 }
 0x1c8   :  { %v2466_v41 = vpop.permute.xlu0 %325  ;;  %v2468_v42 = vpop.permute.xlu1 %336 }
 0x1c9   :  { %v488_v45 = vsel %vm345_vm2, %v2468_v42, 0 }
 0x1cc   :  { %v2470_v43 = vpop.permute.xlu0 %327  ;;  %v2486_v46 = vpop.permute.xlu1 %329 }
 0x1cd   :  { %1853 = vmatmul.mubr.msk.bf16.vlgmr.msra.gmra.mrb[8].mxu0 %vm345_vm2, %v2466_v41  ;;  %1859 = vmatmul.mubr.msk.bf16.vlgmr.msra.gmra.mrb[8].mxu1 %vm345_vm2, %v2470_v43 }
 0x1ce   :  { %1863 = vmatpush3.bf16.xpose.msra.mxu0 %v488_v45  ;;  %1864 = vmatprep.mubr.msk.bf16.mxu0 %vm2244_vm0, %v2243_v0 }
 0x1cf   :  { %1869 = vmatpush3.bf16.msra.mxu1 %v591_v44  ;;  %1874 = vmatprep.subr.bf16.mxu0 %v2243_v0 }
 0x1d0   :  { %1870 = vmatprep.mubr.msk.bf16.mxu1 %vm2244_vm0, %v2243_v0  ;;  %1880 = vmatprep.subr.bf16.mxu1 %v2243_v0 }
 0x1d5   :  { %1865 = vmatmul.mubr.msk.bf16.vlgmr.msra.gmra.mrb[12].mxu0 %vm345_vm2, %v2486_v46 }
 0x1d6   :  { %1876 = vmatprep.mubr.msk.bf16.mxu0 %vm2244_vm0, %v2243_v0 }
 0x22e   :  { %v386_v48 = vpop.f32.mrb[4].mxu1 }
 0x22f   :  { %v534_v49 = vsel %vm531_vm4, -1e+09, %v386_v48  ;;  %v1848_v50 = vpop.f32.mrb[5].mxu1 }
 0x230   :  { %v389_v51 = vpop.f32.mrb[6].mxu1  ;;  %v538_v52 = vsel %vm345_vm2, %v534_v49, -inf }
 0x231   :  { %539 = vmax.xlane.f32.xlu0 %v538_v52  ;;  %v1849_v53 = vpop.f32.mrb[7].mxu1 }
 0x2a0   :  { %v432_v54 = vpop.f32.mrb[8].mxu0  ;;  %v478_v55 = vpop.f32.mrb[8].mxu1 }
 0x2a1   :  { %v535_v56 = vsel %vm531_vm4, -1e+09, %v432_v54  ;;  %v536_v57 = vsel %vm531_vm4, -1e+09, %v478_v55  ;;  %v1854_v58 = vpop.f32.mrb[9].mxu0  ;;  %v1860_v59 = vpop.f32.mrb[9].mxu1 }
 0x2a2   :  { %v435_v60 = vpop.f32.mrb[10].mxu0  ;;  %v481_v61 = vpop.f32.mrb[10].mxu1  ;;  %v544_v62 = vsel %vm345_vm2, %v536_v57, -inf  ;;  %v541_v63 = vsel %vm345_vm2, %v535_v56, -inf }
 0x2a3   :  { %545 = vmax.xlane.f32.xlu0 %v544_v62  ;;  %v1861_v1 = vpop.f32.mrb[11].mxu1  ;;  %542 = vmax.xlane.f32.xlu1 %v541_v63  ;;  %v1855_v2 = vpop.f32.mrb[11].mxu0  ;;  %v988_v60 = vrot.slane %v2431_v25, 4  ;;  %v1084_v62 = vrot.slane %v2456_v37, 4  ;;  %v987_v63 = vrot.slane %v2439_v28, 4  ;;  %v1236_v25 = vrot.slane %v2454_v36, 4 }
 0x2a4   :  { %v1083_v2 = vrot.slane %v2470_v43, 4 }
 0x2a5   :  { %v993_v61 = vsel %vm345_vm2, %v988_v60, 0  ;;  %v1089_v1 = vsel %vm345_vm2, %v1084_v62, 0  ;;  %v1241_v37 = vsel %vm589_vm3, %v1236_v25, 0 }
 0x2a8   :  { %v524_v3 = vpop.f32.mrb[12].mxu0 }
 0x2a9   :  { %v537_v4 = vsel %vm531_vm4, -1e+09, %v524_v3  ;;  %v1866_v5 = vpop.f32.mrb[13].mxu0 }
 0x2aa   :  { %v527_v6 = vpop.f32.mrb[14].mxu0  ;;  %v547_v7 = vsel %vm345_vm2, %v537_v4, -inf }
 0x2ab   :  { %548 = vmax.xlane.f32.xlu0 %v547_v7  ;;  %v1867_v8 = vpop.f32.mrb[15].mxu0 }
 0x2b4   :  { %339 = vrot.lane.b32.xlu1 %v2454_v36, %s2246_s6 }
 0x2be   :  { %v540_v9 = vpop.xlane.xlu0 %539 }
 0x2bf   :  { %v550_v10 = vsub.f32 %v534_v49, %v540_v9 }
 0x2c1   :  { %v554_v11 = vmul.f32 1.442695, %v550_v10 }
 0x2c3   :  { %2037 = vpow2.f32 %v554_v11 }
 0x2cd   :  { %v2038_v12 = vpop.eup %2037 }
 0x2ce   :  { %v562_v13 = vsel %vm345_vm2, %v2038_v12, 0.0 }
 0x2d8   :  { %563 = vadd.xlane.f32.xlu1 %v562_v13 }
 0x330   :  { %v546_v14 = vpop.xlane.xlu0 %545  ;;  %v543_v15 = vpop.xlane.xlu1 %542 }
 0x331   :  { %v552_v16 = vsub.f32 %v536_v57, %v546_v14  ;;  %v551_v17 = vsub.f32 %v535_v56, %v543_v15 }
 0x333   :  { %v558_v18 = vmul.f32 1.442695, %v552_v16  ;;  %v556_v19 = vmul.f32 1.442695, %v551_v17 }
 0x334   :  { %v2503_v20 = vpop.permute.xlu1 %339 }
 0x335   :  { %2039 = vpow2.f32 %v558_v18  ;;  %v637_v21 = vsel %vm589_vm3, %v2503_v20, 0 }
 0x336   :  { %2041 = vpow2.f32 %v556_v19  ;;  %1875 = vmatpush3.bf16.msra.mxu0 %v637_v21  ;;  %v2031_v19 = vld [vmem:[#allocation7] sm:$0xff]  }
 0x337   :  { %1886 = vmatprep.subr.bf16.mxu0 %v2243_v0 }
 0x338   :  { %v549_v22 = vpop.xlane.xlu0 %548 }
 0x339   :  { %v553_v23 = vsub.f32 %v537_v4, %v549_v22 }
 0x33b   :  { %v560_v24 = vmul.f32 1.442695, %v553_v23 }
 0x33d   :  { %2043 = vpow2.f32 %v560_v24 }
 0x33f   :  { %v2040_v26 = vpop.eup %2039 }
 0x340   :  { %v2042_v27 = vpop.eup %2041  ;;  %v568_v29 = vsel %vm345_vm2, %v2040_v26, 0.0 }
 0x341   :  { %569 = vadd.xlane.f32.xlu1 %v568_v29  ;;  %v565_v30 = vsel %vm345_vm2, %v2042_v27, 0.0 }
 0x342   :  { %566 = vadd.xlane.f32.xlu0 %v565_v30  ;;  %v2552_v30 = vld [vmem:[#allocation5 + $0x8] sm:$0xff] }
 0x343   :  { %vm1181_vm5 = vcmp.gt.f32.partialorder %v2552_v30, 0.5 }
 0x347   :  { %v2044_v31 = vpop.eup %2043 }
 0x348   :  { %v571_v32 = vsel %vm345_vm2, %v2044_v31, 0.0 }
 0x349   :  { %572 = vadd.xlane.f32.xlu0 %v571_v32 }
 0x352   :  { %343 = vrot.lane.b32.xlu1 %v2454_v36, %s2247_s26 }
 0x35f   :  { %341 = vrot.lane.b32.xlu0 %v2454_v36, %s2245_s4 }
 0x365   :  { %v564_v33 = vpop.xlane.xlu1 %563 }
 0x366   :  { %2045 = vrcp.f32 %v564_v33 }
 0x370   :  { %v2046_v34 = vpop.eup %2045 }
 0x371   :  { %v578_v35 = vmul.f32 %v2046_v34, %v2038_v12 }
 0x373   :  { %v582_v39 = vpack.c.bf16 %v578_v35, %v578_v35 }
 0x375   :  { %1871 = vmatmul.mubr.msk.bf16.vlgmr.msra.gmra.mrb[12].mxu1 %vm345_vm2, %v582_v39 }
 0x376   :  { %1882 = vmatprep.mubr.msk.bf16.mxu1 %vm2244_vm0, %v2243_v0 }
 0x3ce   :  { %v570_v40 = vpop.xlane.xlu1 %569 }
 0x3cf   :  { %2047 = vrcp.f32 %v570_v40  ;;  %v567_v44 = vpop.xlane.xlu0 %566 }
 0x3d0   :  { %2049 = vrcp.f32 %v567_v44 }
 0x3d2   :  { %v2522_v53 = vpop.permute.xlu1 %343 }
 0x3d3   :  { %v729_v56 = vsel %vm589_vm3, %v2522_v53, 0 }
 0x3d6   :  { %v573_v45 = vpop.xlane.xlu0 %572 }
 0x3d7   :  { %2051 = vrcp.f32 %v573_v45 }
 0x3d9   :  { %v2048_v47 = vpop.eup %2047 }
 0x3da   :  { %v2050_v48 = vpop.eup %2049  ;;  %v580_v49 = vmul.f32 %v2048_v47, %v2040_v26  ;;  %v2518_v50 = vpop.permute.xlu0 %341 }
 0x3db   :  { %v579_v51 = vmul.f32 %v2050_v48, %v2042_v27  ;;  %v683_v52 = vsel %vm589_vm3, %v2518_v50, 0 }
 0x3dc   :  { %1881 = vmatpush3.bf16.msra.mxu1 %v683_v52  ;;  %v584_v54 = vpack.c.bf16 %v580_v49, %v580_v49  ;;  %v1036_v52 = vrot.slane %v2458_v38, 4  ;;  %v1283_v38 = vrot.slane %v2503_v20, 4 }
 0x3dd   :  { %v583_v55 = vpack.c.bf16 %v579_v51, %v579_v51  ;;  %v2032_v51 = vld [vmem:[#allocation7 + $0x8] sm:$0xff]  }
 0x3df   :  { %1877 = vmatmul.mubr.msk.bf16.vlgmr.msra.gmra.mrb[16].mxu0 %vm345_vm2, %v583_v55  ;;  %1883 = vmatmul.mubr.msk.bf16.vlgmr.msra.gmra.mrb[16].mxu1 %vm345_vm2, %v584_v54  ;;  %v1041_v54 = vsel %vm345_vm2, %v1036_v52, 0  ;;  %v1132_v55 = vrot.slane %v2468_v42, 4  ;;  %v1288_v42 = vsel %vm589_vm3, %v1283_v38, 0 }
 0x3e0   :  { %1887 = vmatpush3.bf16.msra.mxu0 %v729_v56  ;;  %1888 = vmatprep.mubr.msk.bf16.mxu0 %vm2244_vm0, %v2243_v0  ;;  %v1035_v56 = vrot.slane %v2466_v41, 4 }
 0x3e1   :  { %v2052_v57 = vpop.eup %2051  ;;  %1900 = vmatprep.subr.bf16.mxu0 %v2243_v0  ;;  %1896 = vmatprep.mubr.msk.bf16.mxu1 %vm146_vm1, %v2031_v19 }
 0x3e2   :  { %v581_v58 = vmul.f32 %v2052_v57, %v2044_v31  ;;  %v1137_v57 = vsel %vm345_vm2, %v1132_v55, 0 }
 0x3e4   :  { %v585_v59 = vpack.c.bf16 %v581_v58, %v581_v58  ;;  %v1131_v58 = vrot.slane %v2486_v46, 4 }
 0x3e7   :  { %1889 = vmatmul.mubr.msk.bf16.vlgmr.msra.gmra.mrb[20].mxu0 %vm345_vm2, %v585_v59 }
 0x3e8   :  { %1902 = vmatprep.mubr.msk.bf16.mxu0 %vm2244_vm0, %v2243_v0 }
 0x3e9   :  { %1901 = vmatpush3.bf16.xpose.msra.mxu0 %v993_v61 }
 0x3ea   :  { %1912 = vmatprep.subr.bf16.mxu0 %v2243_v0 }
 0x3f0   :  { %1903 = vmatmul.mubr.msk.bf16.vlgmr.msra.gmra.mrb[24].mxu0 %vm345_vm2, %v987_v63 }
 0x3f1   :  { %1913 = vmatpush3.bf16.xpose.msra.mxu0 %v1089_v1  ;;  %1914 = vmatprep.mubr.msk.bf16.mxu0 %vm2244_vm0, %v2243_v0 }
 0x3f2   :  { %1924 = vmatprep.subr.bf16.mxu0 %v2243_v0 }
 0x3f8   :  { %1915 = vmatmul.mubr.msk.bf16.vlgmr.msra.gmra.mrb[28].mxu0 %vm345_vm2, %v1083_v2 }
 0x3f9   :  { %1925 = vmatpush3.bf16.msra.mxu0 %v1241_v37  ;;  %1926 = vmatprep.mubr.msk.bf16.mxu0 %vm2244_vm0, %v2243_v0 }
 0x3fa   :  { %1936 = vmatprep.subr.bf16.mxu0 %v2243_v0 }
 0x448   :  { %v627_v28 = vpop.f32.mrb[12].mxu1 }
 0x449   :  { %v1872_v3 = vpop.f32.mrb[13].mxu1 }
 0x44a   :  { %v630_v4 = vpop.f32.mrb[14].mxu1 }
 0x44b   :  { %v1873_v5 = vpop.f32.mrb[15].mxu1 }
 0x4b2   :  { %v673_v6 = vpop.f32.mrb[16].mxu0  ;;  %v719_v7 = vpop.f32.mrb[16].mxu1 }
 0x4b3   :  { %v1982_v8 = vpack.i.bf16 %v673_v6, %v627_v28  ;;  %v1878_v36 = vpop.f32.mrb[17].mxu0  ;;  %v1884_v9 = vpop.f32.mrb[17].mxu1 }
 0x4b4   :  { %v676_v43 = vpop.f32.mrb[18].mxu0  ;;  %v722_v10 = vpop.f32.mrb[18].mxu1 }
 0x4b5   :  { %1983 = vxpose.xlu1.b32.start.end [1/1] (short) (narrow) %v1982_v8, 8  ;;  %v1879_v11 = vpop.f32.mrb[19].mxu0  ;;  %v1885_v12 = vpop.f32.mrb[19].mxu1 }
 0x4ba   :  { %v765_v13 = vpop.f32.mrb[20].mxu0 }
 0x4bb   :  { %v1989_v14 = vpack.i.bf16 %v765_v13, %v719_v7  ;;  %v1890_v15 = vpop.f32.mrb[21].mxu0  ;;  %v1330_v7 = vrot.slane %v2518_v50, 4 }
 0x4bc   :  { %v768_v16 = vpop.f32.mrb[22].mxu0 }
 0x4bd   :  { %1990 = vxpose.xlu0.b32.start.end [1/1] (short) (narrow) %v1989_v14, 8  ;;  %v1891_v17 = vpop.f32.mrb[23].mxu0  ;;  %v1335_v43 = vsel %vm589_vm3, %v1330_v7, 0 }
 0x4c3   :  { %v1029_v18 = vpop.f32.mrb[24].mxu0 }
 0x4c4   :  { %v1904_v21 = vpop.f32.mrb[25].mxu0  ;;  %v1184_v31 = vsel %vm1181_vm5, -1e+09, %v1029_v18 }
 0x4c5   :  { %v1032_v22 = vpop.f32.mrb[26].mxu0  ;;  %v1188_v32 = vsel %vm345_vm2, %v1184_v31, -inf }
 0x4c6   :  { %v1905_v23 = vpop.f32.mrb[27].mxu0 }
 0x4cb   :  { %v1125_v24 = vpop.f32.mrb[28].mxu0 }
 0x4cc   :  { %v1916_v26 = vpop.f32.mrb[29].mxu0  ;;  %v1186_v33 = vsel %vm1181_vm5, -1e+09, %v1125_v24 }
 0x4cd   :  { %v1128_v27 = vpop.f32.mrb[30].mxu0  ;;  %v1194_v34 = vsel %vm345_vm2, %v1186_v33, -inf }
 0x4ce   :  { %v1917_v29 = vpop.f32.mrb[31].mxu0 }
 0x4ea   :  { %1189 = vmax.xlane.f32.xlu0 %v1188_v32 }
 0x4ee   :  { %1195 = vmax.xlane.f32.xlu0 %v1194_v34 }
 0x535   :  { %v1984_v35 = vpop.trf.xlu1 }
 0x536   :  { %v1988_v39 = vunpack.i.h.bf16 %v1984_v35  ;;  %v1985_v40 = vunpack.i.l.bf16 %v1984_v35 }
 0x538   :  { %v899_v44 = vpack.c.bf16 %v1988_v39, %v1985_v40 }
 0x53a   :  { %1892 = vmatprep.subr.bf16.mxu1 %v899_v44 }
 0x53b   :  { %1893 = vmatpush3.bf16.msra.mxu1 %v899_v44 }
 0x53d   :  { %v1991_v45 = vpop.trf.xlu0 }
 0x53e   :  { %v1995_v47 = vunpack.i.h.bf16 %v1991_v45  ;;  %v1992_v48 = vunpack.i.l.bf16 %v1991_v45 }
 0x540   :  { %v900_v49 = vpack.c.bf16 %v1995_v47, %v1992_v48 }
 0x542   :  { %1894 = vmatprep.subr.bf16.mxu1 %v900_v49 }
 0x543   :  { %1895 = vmatpush3.bf16.msra.mxu1 %v900_v49 }
 0x544   :  { %1906 = vmatprep.subr.bf16.mxu1 %v2243_v0 }
 0x546   :  { %1897 = vmatmul.mubr.msk.bf16.vlgmr.msra.gmra.mrb[20].mxu1 %vm146_vm1, %v2032_v51 }
 0x547   :  { %1908 = vmatprep.mubr.msk.bf16.mxu1 %vm2244_vm0, %v2243_v0 }
 0x54c   :  { %1907 = vmatpush3.bf16.xpose.msra.mxu1 %v1041_v54 }
 0x54d   :  { %1918 = vmatprep.subr.bf16.mxu1 %v2243_v0 }
 0x553   :  { %1909 = vmatmul.mubr.msk.bf16.vlgmr.msra.gmra.mrb[24].mxu1 %vm345_vm2, %v1035_v56  ;;  %v1377_v56 = vrot.slane %v2522_v53, 4 }
 0x554   :  { %1919 = vmatpush3.bf16.xpose.msra.mxu1 %v1137_v57  ;;  %1920 = vmatprep.mubr.msk.bf16.mxu1 %vm2244_vm0, %v2243_v0 }
 0x555   :  { %1930 = vmatprep.subr.bf16.mxu1 %v2243_v0 }
 0x55b   :  { %1921 = vmatmul.mubr.msk.bf16.vlgmr.msra.gmra.mrb[28].mxu1 %vm345_vm2, %v1131_v58  ;;  %v1382_v58 = vsel %vm589_vm3, %v1377_v56, 0 }
 0x55c   :  { %1931 = vmatpush3.bf16.msra.mxu1 %v1288_v42  ;;  %1932 = vmatprep.mubr.msk.bf16.mxu1 %vm2244_vm0, %v2243_v0 }
 0x55d   :  { %1942 = vmatprep.subr.bf16.mxu1 %v2243_v0 }
 0x577   :  { %v1190_v41 = vpop.xlane.xlu0 %1189 }
 0x578   :  { %v1200_v59 = vsub.f32 %v1184_v31, %v1190_v41 }
 0x57a   :  { %v1204_v60 = vmul.f32 1.442695, %v1200_v59 }
 0x57b   :  { %v1196_v61 = vpop.xlane.xlu0 %1195 }
 0x57c   :  { %2053 = vpow2.f32 %v1204_v60  ;;  %v1202_v62 = vsub.f32 %v1186_v33, %v1196_v61 }
 0x57e   :  { %v1208_v63 = vmul.f32 1.442695, %v1202_v62 }
 0x580   :  { %2055 = vpow2.f32 %v1208_v63 }
 0x586   :  { %v2054_v20 = vpop.eup %2053 }
 0x587   :  { %v1212_v46 = vsel %vm345_vm2, %v2054_v20, 0.0 }
 0x588   :  { %1213 = vadd.xlane.f32.xlu0 %v1212_v46 }
 0x58a   :  { %v2056_v1 = vpop.eup %2055 }
 0x58b   :  { %v1218_v25 = vsel %vm345_vm2, %v2056_v1, 0.0 }
 0x58c   :  { %1219 = vadd.xlane.f32.xlu0 %v1218_v25 }
 0x615   :  { %v1214_v2 = vpop.xlane.xlu0 %1213 }
 0x616   :  { %2057 = vrcp.f32 %v1214_v2 }
 0x619   :  { %v1220_v37 = vpop.xlane.xlu0 %1219  ;;  %v2584_v28 = vpop.f32.mrb[20].mxu1 }
 0x61a   :  { %2059 = vrcp.f32 %v1220_v37  ;;  %v2586_v3 = vpop.f32.mrb[21].mxu1  ;;  %v2033_v37 = vld [vmem:[#allocation7] sm:$0xff]  }
 0x61b   :  { %v2588_v4 = vpop.f32.mrb[22].mxu1 }
 0x61c   :  { %v2590_v5 = vpop.f32.mrb[23].mxu1 }
 0x620   :  { %v2058_v6 = vpop.eup %2057 }
 0x621   :  { %v1228_v8 = vmul.f32 %v2058_v6, %v2054_v20 }
 0x623   :  { %v1232_v36 = vpack.c.bf16 %v1228_v8, %v1228_v8 }
 0x624   :  { %v2060_v9 = vpop.eup %2059 }
 0x625   :  { %1927 = vmatmul.mubr.msk.bf16.vlgmr.msra.gmra.mrb[32].mxu0 %vm345_vm2, %v1232_v36  ;;  %v1230_v11 = vmul.f32 %v2060_v9, %v2056_v1 }
 0x626   :  { %1937 = vmatpush3.bf16.msra.mxu0 %v1335_v43  ;;  %v1077_v10 = vpop.f32.mrb[24].mxu1  ;;  %1938 = vmatprep.mubr.msk.bf16.mxu0 %vm2244_vm0, %v2243_v0 }
 0x627   :  { %v1185_v12 = vsel %vm1181_vm5, -1e+09, %v1077_v10  ;;  %v1910_v13 = vpop.f32.mrb[25].mxu1  ;;  %v1234_v16 = vpack.c.bf16 %v1230_v11, %v1230_v11 }
 0x628   :  { %v1080_v14 = vpop.f32.mrb[26].mxu1  ;;  %v1191_v50 = vsel %vm345_vm2, %v1185_v12, -inf  ;;  %v2035_v13 = vld [vmem:[%s2661_s9] sm:$0xff]  }
 0x629   :  { %1192 = vmax.xlane.f32.xlu1 %v1191_v50  ;;  %v1911_v15 = vpop.f32.mrb[27].mxu1  ;;  %v2036_v14 = vld [vmem:[%s2661_s9 + $0x8] sm:$0xff]  }
 0x62d   :  { %1939 = vmatmul.mubr.msk.bf16.vlgmr.msra.gmra.mrb[36].mxu0 %vm345_vm2, %v1234_v16 }
 0x62e   :  { %v1173_v17 = vpop.f32.mrb[28].mxu1  ;;  %1952 = vmatprep.mubr.msk.bf16.mxu0 %vm146_vm1, %v2033_v37 }
 0x62f   :  { %v1187_v18 = vsel %vm1181_vm5, -1e+09, %v1173_v17  ;;  %v1922_v19 = vpop.f32.mrb[29].mxu1 }
 0x630   :  { %v1176_v21 = vpop.f32.mrb[30].mxu1  ;;  %v1197_v22 = vsel %vm345_vm2, %v1187_v18, -inf }
 0x631   :  { %1198 = vmax.xlane.f32.xlu1 %v1197_v22  ;;  %v1923_v23 = vpop.f32.mrb[31].mxu1 }
 0x6b6   :  { %v1193_v24 = vpop.xlane.xlu1 %1192 }
 0x6b7   :  { %v1201_v26 = vsub.f32 %v1185_v12, %v1193_v24  ;;  %v2034_v12 = vld [vmem:[#allocation7 + $0x8] sm:$0xff]  }
 0x6b9   :  { %v1206_v27 = vmul.f32 1.442695, %v1201_v26 }
 0x6bb   :  { %2061 = vpow2.f32 %v1206_v27 }
 0x6be   :  { %v1199_v29 = vpop.xlane.xlu1 %1198 }
 0x6bf   :  { %v1203_v31 = vsub.f32 %v1187_v18, %v1199_v29 }
 0x6c1   :  { %v1210_v32 = vmul.f32 1.442695, %v1203_v31 }
 0x6c3   :  { %2063 = vpow2.f32 %v1210_v32 }
 0x6c5   :  { %v2062_v33 = vpop.eup %2061 }
 0x6c6   :  { %v1215_v34 = vsel %vm345_vm2, %v2062_v33, 0.0 }
 0x6c7   :  { %1216 = vadd.xlane.f32.xlu1 %v1215_v34 }
 0x6cd   :  { %v2064_v30 = vpop.eup %2063 }
 0x6ce   :  { %v1221_v35 = vsel %vm345_vm2, %v2064_v30, 0.0 }
 0x6cf   :  { %1222 = vadd.xlane.f32.xlu1 %v1221_v35 }
 0x6f8   :  { %v1277_v39 = vpop.f32.mrb[32].mxu0 }
 0x6f9   :  { %v1928_v40 = vpop.f32.mrb[33].mxu0 }
 0x6fa   :  { %v1280_v44 = vpop.f32.mrb[34].mxu0 }
 0x6fb   :  { %v1929_v45 = vpop.f32.mrb[35].mxu0 }
 0x700   :  { %v1371_v47 = vpop.f32.mrb[36].mxu0 }
 0x701   :  { %v1940_v48 = vpop.f32.mrb[37].mxu0 }
 0x702   :  { %v1374_v49 = vpop.f32.mrb[38].mxu0 }
 0x703   :  { %v1941_v51 = vpop.f32.mrb[39].mxu0 }
 0x754   :  { %v1217_v52 = vpop.xlane.xlu1 %1216 }
 0x755   :  { %2065 = vrcp.f32 %v1217_v52 }
 0x75c   :  { %v1223_v54 = vpop.xlane.xlu1 %1222 }
 0x75d   :  { %2067 = vrcp.f32 %v1223_v54 }
 0x75f   :  { %v2066_v55 = vpop.eup %2065 }
 0x760   :  { %v1229_v57 = vmul.f32 %v2066_v55, %v2062_v33 }
 0x762   :  { %v1233_v38 = vpack.c.bf16 %v1229_v57, %v1229_v57 }
 0x764   :  { %1933 = vmatmul.mubr.msk.bf16.vlgmr.msra.gmra.mrb[32].mxu1 %vm345_vm2, %v1233_v38 }
 0x765   :  { %1943 = vmatpush3.bf16.msra.mxu1 %v1382_v58  ;;  %1944 = vmatprep.mubr.msk.bf16.mxu1 %vm2244_vm0, %v2243_v0 }
 0x766   :  { %1956 = vmatprep.subr.bf16.mxu1 %v2243_v0 }
 0x767   :  { %v2068_v42 = vpop.eup %2067 }
 0x768   :  { %v1231_v41 = vmul.f32 %v2068_v42, %v2064_v30 }
 0x76a   :  { %v1235_v59 = vpack.c.bf16 %v1231_v41, %v1231_v41 }
 0x76c   :  { %1945 = vmatmul.mubr.msk.bf16.vlgmr.msra.gmra.mrb[36].mxu1 %vm345_vm2, %v1235_v59 }
 0x76d   :  { %1960 = vmatprep.mubr.msk.bf16.mxu1 %vm2244_vm0, %v2243_v0  ;;  %1957 = vmatpush3.bf16.msra.mxu1 %v2035_v13 }
 0x76e   :  { %1958 = vmatprep.subr.bf16.mxu1 %v2243_v0 }
 0x771   :  { %1959 = vmatpush3.bf16.msra.mxu1 %v2036_v14 }
 0x837   :  { %v1324_v53 = vpop.f32.mrb[32].mxu1 }
 0x838   :  { %v1996_v60 = vpack.i.bf16 %v1324_v53, %v1277_v39  ;;  %v1934_v61 = vpop.f32.mrb[33].mxu1  ;;  %v1764_v39 = vld [vmem:[%s2662_s10] ss:$0 sm:$0xff] }
 0x839   :  { %v1327_v62 = vpop.f32.mrb[34].mxu1 }
 0x83a   :  { %v1935_v63 = vpop.f32.mrb[35].mxu1  ;;  %1997 = vxpose.xlu0.b32.start.end [1/1] (short) (narrow) %v1996_v60, 8 }
 0x83f   :  { %v1418_v20 = vpop.f32.mrb[36].mxu1 }
 0x840   :  { %v2003_v46 = vpack.i.bf16 %v1418_v20, %v1371_v47  ;;  %v1946_v1 = vpop.f32.mrb[37].mxu1 }
 0x841   :  { %v1421_v25 = vpop.f32.mrb[38].mxu1 }
 0x842   :  { %v1947_v2 = vpop.f32.mrb[39].mxu1  ;;  %2004 = vxpose.xlu1.b32.start.end [1/1] (short) (narrow) %v2003_v46, 8 }
 0x8ba   :  { %v1998_v6 = vpop.trf.xlu0 }
 0x8bb   :  { %v2002_v7 = vunpack.i.h.bf16 %v1998_v6  ;;  %v1999_v8 = vunpack.i.l.bf16 %v1998_v6 }
 0x8bd   :  { %v1552_v36 = vpack.c.bf16 %v2002_v7, %v1999_v8 }
 0x8bf   :  { %1948 = vmatprep.subr.bf16.mxu0 %v1552_v36 }
 0x8c0   :  { %1949 = vmatpush3.bf16.msra.mxu0 %v1552_v36 }
 0x8c2   :  { %v2005_v9 = vpop.trf.xlu1 }
 0x8c3   :  { %v2009_v43 = vunpack.i.h.bf16 %v2005_v9  ;;  %v2006_v10 = vunpack.i.l.bf16 %v2005_v9 }
 0x8c5   :  { %v1553_v11 = vpack.c.bf16 %v2009_v43, %v2006_v10 }
 0x8c7   :  { %1950 = vmatprep.subr.bf16.mxu0 %v1553_v11 }
 0x8c8   :  { %1951 = vmatpush3.bf16.msra.mxu0 %v1553_v11 }
 0x8cb   :  { %1953 = vmatmul.mubr.msk.bf16.vlgmr.msra.gmra.mrb[40].mxu0 %vm146_vm1, %v2034_v12 }
 0x99e   :  { %v1954_v50 = vpop.f32.mrb[40].mxu0 }
 0x99f   :  { %v2015_v15 = vpack.i.bf16 %v1954_v50, %v2584_v28  ;;  %v1608_v16 = vpop.f32.mrb[41].mxu0 }
 0x9a0   :  { %v1955_v17 = vpop.f32.mrb[42].mxu0 }
 0x9a1   :  { %v2020_v18 = vpack.i.bf16 %v1955_v17, %v2588_v4  ;;  %2016 = vrot.lane.b32.xlu1 %v2015_v15, %s2248_s12  ;;  %v1611_v19 = vpop.f32.mrb[43].mxu0 }
 0x9a2   :  { %v2010_v21 = vpack.i.bf16 %v1611_v19, %v2590_v5 }
 0x9a4   :  { %2011 = vrot.lane.b32.xlu0 %v2010_v21, %s2235_s28 }
 0x9a5   :  { %2021 = vrot.lane.b32.xlu1 %v2020_v18, %s2249_s14 }
 0xa13   :  { %v2017_v0 = vpop.permute.xlu1 %2016 }
 0xa14   :  { %v2019_v26 = vunpack.i.h.bf16 %v2017_v0  ;;  %v2018_v27 = vunpack.i.l.bf16 %v2017_v0 }
 0xa16   :  { %v2012_v22 = vpop.permute.xlu0 %2011 }
 0xa17   :  { %v2014_v23 = vunpack.i.h.bf16 %v2012_v22  ;;  %v2013_v24 = vunpack.i.l.bf16 %v2012_v22  ;;  %v2022_v28 = vpop.permute.xlu1 %2021 }
 0xa18   :  { %v2024_v29 = vunpack.i.h.bf16 %v2022_v28  ;;  %v2023_v4 = vunpack.i.l.bf16 %v2022_v28 }
 0xa19   :  { %v1635_v31 = vsel %vm345_vm2, %v1608_v16, %v2014_v23  ;;  %v982_v5 = vsel %vm345_vm2, %v2586_v3, %v2013_v24 }
 0xa1a   :  { %v984_v32 = vsel %vm983_vm6, %v982_v5, %v2018_v27  ;;  %v1636_v33 = vsel %vm983_vm6, %v1635_v31, %v2019_v26 }
 0xa1b   :  { %v986_v34 = vsel %vm985_vm7, %v984_v32, %v2023_v4  ;;  %v1637_v30 = vsel %vm985_vm7, %v1636_v33, %v2024_v29 }
 0xa1c   :  { %v1638_v35 = vpack.c.bf16 %v1637_v30, %v986_v34 }
 0xa1e   :  { %1961 = vmatmul.mubr.msk.bf16.vlgmr.msra.gmra.mrb[40].mxu1 %vm146_vm1, %v1638_v35 }
 0xaf1   :  { %v1699_v40 = vpop.f32.mrb[40].mxu1 }
 0xaf2   :  { %v1700_v44 = vadd.f32 %v1764_v39, %v1699_v40  ;;  %v1962_v45 = vpop.f32.mrb[41].mxu1 }
 0xaf3   :  { %v1702_v47 = vpop.f32.mrb[42].mxu1 }
 0xaf4   :  { %1706 = vst.msk [vmem:[#allocation13] sm:$0xff] %vm146_vm1, %v1700_v44  ;;  %v1703_v3 = vadd.f32 %v1764_v39, %v1702_v47  ;;  %v1963_v48 = vpop.f32.mrb[43].mxu1 }
 0xaf6   :  { %1707 = vst.msk [vmem:[#allocation13 + $0x8] sm:$0xff] %vm146_vm1, %v1703_v3 }
 0xaf7   :  { %2212 = shalt.err (!%p2209_p10)
}
 0xaf8   :  { %s2213_s20 = scalar_lea.hbm %s2663_s11, 256 }
 0xaf9   :  { %p2214_p11 = scmp.ne.s32.totalorder %s2663_s11, %s2213_s20  ;;  %p2217_p12 = scmp.lt.u32.totalorder %s2213_s20, %s2663_s11 }
 0xafb   :  { %p2219_p13 = pnand %p2217_p12, %p2214_p11 }
 0xafd   :  { %2222 = shalt.err (!%p2219_p13)
}
 0xafe   :  { %1719 = dma.vmem_to_hbm [thread:$0]  %s1714_s15, 256, %s2663_s11, [#allocation4], %s2234_s27, %s2234_s27, %s2235_s28  }
 0xaff   :  { %2231 = dma.done.wait [#allocation4], 256  }
 0xb00   :  { %2232 = vsyncadd [#allocation4], 4294967040 }
 0xb01   :  { %1723 = vsyncpa [#allocation3], 1 }
 0xb02   :  { %1724 = vsyncpa [#allocation6], 1 }
 0xb03   :  { %1725 = vsyncpa [#allocation9], 1 }
 0xb04   :  { %1726 = vsyncpa [#allocation12], 1 }
 0xb05   :  { %1727 = vsyncpa [#allocation4], 1 }

</bundles_post_ra>
